<compile_context>
chip_gen: v7x
topology: tpu7x:2x2x1
jax: 0.10.0
libtpu: 0.0.40
codegen_flags: <defaults>
</compile_context>

<pallas_src>
import jax
import jax.numpy as jnp
from jax.experimental import pallas as pl
from jax.experimental.pallas import tpu as pltpu


MAX_TILE_B = 1024   # largest batch tile (activations at 1024 rows << 32 MiB VMEM)
ALIGN_B = 256       # batch tile alignment: fills 2x256x256 MXU rows on v6e/v7x
K_PAD = 128         # tiny input dim padded to one full lane tile
N_PAD = 128         # lane-dense output width (unmasked vst), sliced in wrapper


def _round_up(x, m):
    return ((x + m - 1) // m) * m


def dqn_kernel(x_ref,
               w1_ref, b1_ref,
               w2_ref, b2_ref,
               w3_ref, b3_ref,
               wq_ref, bq_ref,
               q_ref):
    """One batch tile of the dueling-DQN forward pass, fully resident in VMEM."""
    x = x_ref[...]                                                     # (TB, K_PAD) bf16

    # fc1 + relu  (bf16 operands on the MXU, f32 accumulate, f32 bias/relu)
    h = jnp.dot(x, w1_ref[...], preferred_element_type=jnp.float32) + b1_ref[...]
    h = jnp.maximum(h, 0.0)                                            # (TB, 512)

    # fc2 + relu
    h = jnp.dot(h.astype(jnp.bfloat16), w2_ref[...],
                preferred_element_type=jnp.float32) + b2_ref[...]
    h = jnp.maximum(h, 0.0)                                            # (TB, 256)

    # dropout(p=0.3): identity in inference mode.
    # TODO(synk): training-mode stochastic dropout (pltpu.prng_*) not implemented.

    # fc3 + relu
    h = jnp.dot(h.astype(jnp.bfloat16), w3_ref[...],
                preferred_element_type=jnp.float32) + b3_ref[...]
    h = jnp.maximum(h, 0.0)                                            # (TB, 128)

    # Folded dueling head: Q = h @ W_q + b_q directly (value/advantage combine
    # and the advantage mean were folded into W_q/b_q in the wrapper). Output
    # is padded to 128 lanes for an unmasked, lane-dense store.
    q_ref[...] = jnp.dot(h.astype(jnp.bfloat16), wq_ref[...],
                         preferred_element_type=jnp.float32) + bq_ref[...]


def dqn_forward(x, params):
    """params: dict with w1,b1,w2,b2,w3,b3,wv,bv,wa,ba in (in, out) layout."""
    B, d_in = x.shape
    out_dim = params["wa"].shape[1]
    assert d_in <= K_PAD and out_dim <= N_PAD

    # Guard against (out, in)-layout (untransposed PyTorch) weights.
    assert params["w1"].shape == (d_in, 512), params["w1"].shape
    assert params["w2"].shape == (512, 256), params["w2"].shape
    assert params["w3"].shape == (256, 128), params["w3"].shape
    assert params["wv"].shape == (128, 1), params["wv"].shape
    assert params["wa"].shape == (128, out_dim), params["wa"].shape

    # ---- weight prep (all folding/padding in f32, single cast to bf16) ----
    w1 = jnp.pad(params["w1"].astype(jnp.float32),
                 ((0, K_PAD - d_in), (0, 0))).astype(jnp.bfloat16)      # (128, 512)
    w2 = params["w2"].astype(jnp.bfloat16)                             # (512, 256)
    w3 = params["w3"].astype(jnp.bfloat16)                             # (256, 128)

    wv = params["wv"].astype(jnp.float32)                              # (128, 1)
    wa = params["wa"].astype(jnp.float32)                              # (128, out)
    bv = params["bv"].astype(jnp.float32)                              # (1, 1)
    ba = params["ba"].astype(jnp.float32)                              # (1, out)
    # Fold dueling combine: q_j = h.(wa_j + wv - mean_k wa_k) + (ba_j + bv - mean ba)
    wq = wa + wv - jnp.mean(wa, axis=1, keepdims=True)                 # (128, out)
    bq = ba + bv - jnp.mean(ba, axis=1, keepdims=True)                 # (1, out)
    # Pad folded head to a lane-dense 128-wide output (padded cols are zero).
    wq = jnp.pad(wq, ((0, 0), (0, N_PAD - out_dim))).astype(jnp.bfloat16)
    bq = jnp.pad(bq, ((0, 0), (0, N_PAD - out_dim)))

    b1 = params["b1"].astype(jnp.float32)
    b2 = params["b2"].astype(jnp.float32)
    b3 = params["b3"].astype(jnp.float32)

    # ---- batch tiling: few, large, 256-aligned tiles; even count for v7x ----
    pB0 = _round_up(max(B, 1), ALIGN_B)
    if pB0 <= MAX_TILE_B:
        n_tiles = 1
        tile_b = pB0
    else:
        n_tiles = int(pl.cdiv(pB0, MAX_TILE_B))
        if n_tiles % 2:        # balance the "parallel" batch grid across 2 TCs (v7x)
            n_tiles += 1
        tile_b = _round_up(int(pl.cdiv(pB0, n_tiles)), ALIGN_B)
    pB = n_tiles * tile_b

    # x: cast to bf16 (halves the only per-step streamed DMA), pad batch rows
    # and the 12-wide feature dim up to a full (pB, 128) tile-aligned slab.
    x = jnp.pad(x.astype(jnp.bfloat16), ((0, pB - B), (0, K_PAD - d_in)))

    flops = 2 * pB * (K_PAD * 512 + 512 * 256 + 256 * 128 + 128 * N_PAD)
    bytes_accessed = (
        2 * (K_PAD * 512 + 512 * 256 + 256 * 128 + 128 * N_PAD)        # bf16 weights
        + 4 * (512 + 256 + 128 + N_PAD)                                # f32 biases
        + 2 * pB * K_PAD + 4 * pB * N_PAD)                             # bf16 x, f32 q

    def resident(arr):
        # Full-extent block whose index_map always returns block (0, 0):
        # DMA'd into VMEM once, stays resident across all batch-grid steps.
        # (Weights total <0.5 MiB bf16, so double-buffered residency is noise;
        #  pl.Buffered(1) single-buffering intentionally not used.)
        return pl.BlockSpec(arr.shape, lambda i: (0, 0))

    grid_spec = pltpu.PrefetchScalarGridSpec(
        num_scalar_prefetch=0,
        grid=(n_tiles,),
        in_specs=[
            pl.BlockSpec((tile_b, K_PAD), lambda i: (i, 0)),           # x: tiled batch
            resident(w1), resident(b1),
            resident(w2), resident(b2),
            resident(w3), resident(b3),
            resident(wq), resident(bq),
        ],
        out_specs=pl.BlockSpec((tile_b, N_PAD), lambda i: (i, 0)),
    )

    q = pl.pallas_call(
        dqn_kernel,
        out_shape=jax.ShapeDtypeStruct((pB, N_PAD), jnp.float32),
        grid_spec=grid_spec,
        compiler_params=pltpu.CompilerParams(
            # Batch tiles are independent: shard across v7x's 2 TensorCores
            # (harmless on single-TC v5e/v6e).
            dimension_semantics=("parallel",),
            # Explicit VMEM budget. Worst case (tile_b=1024): x 2x256 KB,
            # q 2x512 KB, weights 2x~0.5 MB, f32 intermediates ~4 MB -> <<32 MiB,
            # which also fits v7x's 64 MiB physical VMEM.
            vmem_limit_bytes=32 * 1024 * 1024,
        ),
        cost_estimate=pl.CostEstimate(
            flops=flops, transcendentals=0, bytes_accessed=bytes_accessed),
    )(x, w1, b1, w2, b2, w3, b3, wq, bq)

    return q[:B, :out_dim]


def init_params(key, input_dim, output_dim):
    """Deterministic synthetic parameters (shapes match the nn.Linear layers)."""
    ks = jax.random.split(key, 10)

    def linear(kw, kb, fan_in, fan_out):
        bound = 1.0 / jnp.sqrt(fan_in)
        w = jax.random.uniform(kw, (fan_in, fan_out), jnp.float32, -bound, bound)
        b = jax.random.uniform(kb, (1, fan_out), jnp.float32, -bound, bound)
        return w, b

    w1, b1 = linear(ks[0], ks[1], input_dim, 512)
    w2, b2 = linear(ks[2], ks[3], 512, 256)
    w3, b3 = linear(ks[4], ks[5], 256, 128)
    wv, bv = linear(ks[6], ks[7], 128, 1)
    wa, ba = linear(ks[8], ks[9], 128, output_dim)
    return dict(w1=w1, b1=b1, w2=w2, b2=b2, w3=w3, b3=b3,
                wv=wv, bv=bv, wa=wa, ba=ba)


def reference_forward(x, p):
    """Pure-JAX reference of DQNetwork.forward (eval mode), mirroring the
    kernel's bf16-matmul-input / f32-accumulate numerics but keeping the
    value/advantage heads separate (the kernel folds them into one weight)."""
    def mm(a, w, b):
        return jnp.dot(a.astype(jnp.bfloat16), w.astype(jnp.bfloat16),
                       preferred_element_type=jnp.float32) + b.astype(jnp.float32)

    h = jnp.maximum(mm(x, p["w1"], p["b1"]), 0.0)
    h = jnp.maximum(mm(h, p["w2"], p["b2"]), 0.0)
    h = jnp.maximum(mm(h, p["w3"], p["b3"]), 0.0)
    value = mm(h, p["wv"], p["bv"])
    adv = mm(h, p["wa"], p["ba"])
    return value + (adv - jnp.mean(adv, axis=-1, keepdims=True))


if __name__ == "__main__":
    INPUT_DIM = 12    # small synthetic state vector
    OUTPUT_DIM = 3    # rock / paper / scissors actions

    key = jax.random.PRNGKey(0)
    k_x, k_p, k_x2, k_x3 = jax.random.split(key, 4)
    params = init_params(k_p, INPUT_DIM, OUTPUT_DIM)

    # Spec-scale tiny batch (padded internally to one 256-row MXU tile).
    x_small = jax.random.normal(k_x, (2, INPUT_DIM), dtype=jnp.float32)
    q_small = jax.block_until_ready(dqn_forward(x_small, params))
    assert q_small.shape == (2, OUTPUT_DIM)
    assert jnp.allclose(q_small, reference_forward(x_small, params),
                        atol=5e-3, rtol=5e-3)

    # Medium batch: padded to a single 512-row tile (no grid-step overhead).
    x_mid = jax.random.normal(k_x2, (300, INPUT_DIM), dtype=jnp.float32)
    q_mid = jax.block_until_ready(dqn_forward(x_mid, params))
    assert q_mid.shape == (300, OUTPUT_DIM)
    assert jnp.allclose(q_mid, reference_forward(x_mid, params),
                        atol=5e-3, rtol=5e-3)

    # Large batch: exercises the even, multi-tile "parallel" batch grid
    # (2600 -> 4 tiles of 768 rows) plus row/column padding.
    x_big = jax.random.normal(k_x3, (2600, INPUT_DIM), dtype=jnp.float32)
    q_big = jax.block_until_ready(dqn_forward(x_big, params))
    assert q_big.shape == (2600, OUTPUT_DIM)
    assert jnp.allclose(q_big, reference_forward(x_big, params),
                        atol=5e-3, rtol=5e-3)

    print("KERNEL_OK")
</pallas_src>

<mosaic_0001>
module attributes {stable_mosaic.version = 11 : i64} {
  func.func @dqn_kernel(%arg0: i32, %arg1: memref<256x128xbf16, #tpu.memory_space<vmem>>, %arg2: memref<128x512xbf16, #tpu.memory_space<vmem>>, %arg3: memref<1x512xf32, #tpu.memory_space<vmem>>, %arg4: memref<512x256xbf16, #tpu.memory_space<vmem>>, %arg5: memref<1x256xf32, #tpu.memory_space<vmem>>, %arg6: memref<256x128xbf16, #tpu.memory_space<vmem>>, %arg7: memref<1x128xf32, #tpu.memory_space<vmem>>, %arg8: memref<128x128xbf16, #tpu.memory_space<vmem>>, %arg9: memref<1x128xf32, #tpu.memory_space<vmem>>, %arg10: memref<256x128xf32, #tpu.memory_space<vmem>>) attributes {dimension_semantics = [#tpu.dimension_semantics<parallel>], iteration_bounds = array<i64: 1>, scalar_prefetch = 0 : i64, scratch_operands = 0 : i64, tpu.core_type = #tpu.core_type<tc>, window_params = [{transform_indices = @transform_0, window_bounds = array<i64: 256, 128>}, {pipeline_mode = #tpu.pipeline_mode<synchronous>, transform_indices = @transform_1, window_bounds = array<i64: 128, 512>}, {pipeline_mode = #tpu.pipeline_mode<synchronous>, transform_indices = @transform_2, window_bounds = array<i64: 1, 512>}, {pipeline_mode = #tpu.pipeline_mode<synchronous>, transform_indices = @transform_3, window_bounds = array<i64: 512, 256>}, {pipeline_mode = #tpu.pipeline_mode<synchronous>, transform_indices = @transform_4, window_bounds = array<i64: 1, 256>}, {pipeline_mode = #tpu.pipeline_mode<synchronous>, transform_indices = @transform_5, window_bounds = array<i64: 256, 128>}, {pipeline_mode = #tpu.pipeline_mode<synchronous>, transform_indices = @transform_6, window_bounds = array<i64: 1, 128>}, {pipeline_mode = #tpu.pipeline_mode<synchronous>, transform_indices = @transform_7, window_bounds = array<i64: 128, 128>}, {pipeline_mode = #tpu.pipeline_mode<synchronous>, transform_indices = @transform_8, window_bounds = array<i64: 1, 128>}, {transform_indices = @transform_9, window_bounds = array<i64: 256, 128>}]} {
    %c0 = arith.constant 0 : index
    %c0_0 = arith.constant 0 : index
    %0 = vector.load %arg1[%c0, %c0_0] : memref<256x128xbf16, #tpu.memory_space<vmem>>, vector<256x128xbf16>
    %c0_1 = arith.constant 0 : index
    %c0_2 = arith.constant 0 : index
    %1 = vector.load %arg2[%c0_1, %c0_2] : memref<128x512xbf16, #tpu.memory_space<vmem>>, vector<128x512xbf16>
    %cst = arith.constant dense<0.000000e+00> : vector<256x512xf32>
    %2 = tpu.matmul %0, %1, %cst {dimension_numbers = #tpu.dot_dimension_numbers<[1], [0], [0], [1], [0, 0, 1, 1], [], []>} : vector<256x128xbf16>, vector<128x512xbf16>, vector<256x512xf32> -> vector<256x512xf32>
    %c0_3 = arith.constant 0 : index
    %c0_4 = arith.constant 0 : index
    %3 = vector.load %arg3[%c0_3, %c0_4] : memref<1x512xf32, #tpu.memory_space<vmem>>, vector<1x512xf32>
    %4 = vector.broadcast %3 : vector<1x512xf32> to vector<256x512xf32>
    %5 = arith.addf %2, %4 : vector<256x512xf32>
    %cst_5 = arith.constant 0.000000e+00 : f32
    %6 = vector.broadcast %cst_5 : f32 to vector<256x512xf32>
    %7 = arith.maximumf %5, %6 : vector<256x512xf32>
    %8 = arith.truncf %7 : vector<256x512xf32> to vector<256x512xbf16>
    %c0_6 = arith.constant 0 : index
    %c0_7 = arith.constant 0 : index
    %9 = vector.load %arg4[%c0_6, %c0_7] : memref<512x256xbf16, #tpu.memory_space<vmem>>, vector<512x256xbf16>
    %cst_8 = arith.constant dense<0.000000e+00> : vector<256x256xf32>
    %10 = tpu.matmul %8, %9, %cst_8 {dimension_numbers = #tpu.dot_dimension_numbers<[1], [0], [0], [1], [0, 0, 1, 1], [], []>} : vector<256x512xbf16>, vector<512x256xbf16>, vector<256x256xf32> -> vector<256x256xf32>
    %c0_9 = arith.constant 0 : index
    %c0_10 = arith.constant 0 : index
    %11 = vector.load %arg5[%c0_9, %c0_10] : memref<1x256xf32, #tpu.memory_space<vmem>>, vector<1x256xf32>
    %12 = vector.broadcast %11 : vector<1x256xf32> to vector<256x256xf32>
    %13 = arith.addf %10, %12 : vector<256x256xf32>
    %cst_11 = arith.constant 0.000000e+00 : f32
    %14 = vector.broadcast %cst_11 : f32 to vector<256x256xf32>
    %15 = arith.maximumf %13, %14 : vector<256x256xf32>
    %16 = arith.truncf %15 : vector<256x256xf32> to vector<256x256xbf16>
    %c0_12 = arith.constant 0 : index
    %c0_13 = arith.constant 0 : index
    %17 = vector.load %arg6[%c0_12, %c0_13] : memref<256x128xbf16, #tpu.memory_space<vmem>>, vector<256x128xbf16>
    %cst_14 = arith.constant dense<0.000000e+00> : vector<256x128xf32>
    %18 = tpu.matmul %16, %17, %cst_14 {dimension_numbers = #tpu.dot_dimension_numbers<[1], [0], [0], [1], [0, 0, 1, 1], [], []>} : vector<256x256xbf16>, vector<256x128xbf16>, vector<256x128xf32> -> vector<256x128xf32>
    %c0_15 = arith.constant 0 : index
    %c0_16 = arith.constant 0 : index
    %19 = vector.load %arg7[%c0_15, %c0_16] : memref<1x128xf32, #tpu.memory_space<vmem>>, vector<1x128xf32>
    %20 = vector.broadcast %19 : vector<1x128xf32> to vector<256x128xf32>
    %21 = arith.addf %18, %20 : vector<256x128xf32>
    %cst_17 = arith.constant 0.000000e+00 : f32
    %22 = vector.broadcast %cst_17 : f32 to vector<256x128xf32>
    %23 = arith.maximumf %21, %22 : vector<256x128xf32>
    %24 = arith.truncf %23 : vector<256x128xf32> to vector<256x128xbf16>
    %c0_18 = arith.constant 0 : index
    %c0_19 = arith.constant 0 : index
    %25 = vector.load %arg8[%c0_18, %c0_19] : memref<128x128xbf16, #tpu.memory_space<vmem>>, vector<128x128xbf16>
    %cst_20 = arith.constant dense<0.000000e+00> : vector<256x128xf32>
    %26 = tpu.matmul %24, %25, %cst_20 {dimension_numbers = #tpu.dot_dimension_numbers<[1], [0], [0], [1], [0, 0, 1, 1], [], []>} : vector<256x128xbf16>, vector<128x128xbf16>, vector<256x128xf32> -> vector<256x128xf32>
    %c0_21 = arith.constant 0 : index
    %c0_22 = arith.constant 0 : index
    %27 = vector.load %arg9[%c0_21, %c0_22] : memref<1x128xf32, #tpu.memory_space<vmem>>, vector<1x128xf32>
    %28 = vector.broadcast %27 : vector<1x128xf32> to vector<256x128xf32>
    %29 = arith.addf %26, %28 : vector<256x128xf32>
    %c0_23 = arith.constant 0 : index
    %c0_24 = arith.constant 0 : index
    %30 = vector.load %arg10[%c0_23, %c0_24] : memref<256x128xf32, #tpu.memory_space<vmem>>, vector<256x128xf32>
    tpu.vector_store %arg10[%c0_23, %c0_24], %29 {strides = array<i32>} : memref<256x128xf32, #tpu.memory_space<vmem>>, vector<256x128xf32>,
    return
  }
  func.func @transform_0(%arg0: i32) -> (i32, i32) {
    %c0_i32 = arith.constant 0 : i32
    %c0_i32_0 = arith.constant 0 : i32
    return %arg0, %c0_i32 : i32, i32
  }
  func.func @transform_1(%arg0: i32) -> (i32, i32) {
    %c0_i32 = arith.constant 0 : i32
    %c0_i32_0 = arith.constant 0 : i32
    %c0_i32_1 = arith.constant 0 : i32
    return %c0_i32, %c0_i32_0 : i32, i32
  }
  func.func @transform_2(%arg0: i32) -> (i32, i32) {
    %c0_i32 = arith.constant 0 : i32
    %c0_i32_0 = arith.constant 0 : i32
    %c0_i32_1 = arith.constant 0 : i32
    return %c0_i32, %c0_i32_0 : i32, i32
  }
  func.func @transform_3(%arg0: i32) -> (i32, i32) {
    %c0_i32 = arith.constant 0 : i32
    %c0_i32_0 = arith.constant 0 : i32
    %c0_i32_1 = arith.constant 0 : i32
    return %c0_i32, %c0_i32_0 : i32, i32
  }
  func.func @transform_4(%arg0: i32) -> (i32, i32) {
    %c0_i32 = arith.constant 0 : i32
    %c0_i32_0 = arith.constant 0 : i32
    %c0_i32_1 = arith.constant 0 : i32
    return %c0_i32, %c0_i32_0 : i32, i32
  }
  func.func @transform_5(%arg0: i32) -> (i32, i32) {
    %c0_i32 = arith.constant 0 : i32
    %c0_i32_0 = arith.constant 0 : i32
    %c0_i32_1 = arith.constant 0 : i32
    return %c0_i32, %c0_i32_0 : i32, i32
  }
  func.func @transform_6(%arg0: i32) -> (i32, i32) {
    %c0_i32 = arith.constant 0 : i32
    %c0_i32_0 = arith.constant 0 : i32
    %c0_i32_1 = arith.constant 0 : i32
    return %c0_i32, %c0_i32_0 : i32, i32
  }
  func.func @transform_7(%arg0: i32) -> (i32, i32) {
    %c0_i32 = arith.constant 0 : i32
    %c0_i32_0 = arith.constant 0 : i32
    %c0_i32_1 = arith.constant 0 : i32
    return %c0_i32, %c0_i32_0 : i32, i32
  }
  func.func @transform_8(%arg0: i32) -> (i32, i32) {
    %c0_i32 = arith.constant 0 : i32
    %c0_i32_0 = arith.constant 0 : i32
    %c0_i32_1 = arith.constant 0 : i32
    return %c0_i32, %c0_i32_0 : i32, i32
  }
  func.func @transform_9(%arg0: i32) -> (i32, i32) {
    %c0_i32 = arith.constant 0 : i32
    %c0_i32_0 = arith.constant 0 : i32
    return %arg0, %c0_i32 : i32, i32
  }
}

</mosaic_0001>

<bundles_post_ra>
// kernel: tpu_custom_call.1
= control target key start
LH: loop header
LB: loop body
LE: loop exit
PB: predicated region body
PF: predicated region fallthrough
CT: control target
= control target key end

     0   :  { %14 = vsyncpa [#allocation3], 0  ;;  %s3953_s0 = inlined_call_operand.hbm [shape: bf16[256,128], index: 0, kind: input, shape index: {}]   ;;  %s3954_s1 = inlined_call_operand.hbm [shape: bf16[128,512], index: 1, kind: input, shape index: {}]   ;;  %s3955_s2 = inlined_call_operand.vmem [shape: f32[1,512], index: 2, kind: input, shape index: {}]   ;;  %s3956_s3 = inlined_call_operand.hbm [shape: bf16[512,256], index: 3, kind: input, shape index: {}]   ;;  %s3957_s4 = inlined_call_operand.vmem [shape: f32[1,256], index: 4, kind: input, shape index: {}]   ;;  %s3958_s5 = inlined_call_operand.hbm [shape: bf16[256,128], index: 5, kind: input, shape index: {}]   ;;  %s3959_s6 = inlined_call_operand.vmem [shape: f32[1,128], index: 6, kind: input, shape index: {}]   ;;  %s3960_s7 = inlined_call_operand.hbm [shape: bf16[128,128], index: 7, kind: input, shape index: {}]   ;;  %s3961_s8 = inlined_call_operand.vmem [shape: f32[1,128], index: 8, kind: input, shape index: {}]   ;;  %s3962_s9 = inlined_call_operand.hbm [shape: f32[256,128], index: 9, kind: output, shape index: {}]  }
   0x1   :  { %15 = vsyncpa [#allocation6], 0 }
   0x2   :  { %16 = vsyncpa [#allocation9], 0 }
   0x3   :  { %17 = vsyncpa [#allocation4], 0  ;;  %s3330_s30 = smov [#allocation5]   ;;  %s3190_s13 = scalar_lea.hbm %s3954_s1, 4096 }
   0x4   :  { %s35_s10 = sshll.u32 %s3330_s30, 4  ;;  %p3191_p0 = scmp.ne.s32.totalorder %s3954_s1, %s3190_s13  ;;  %s36_s10 = int_to_ptr.vmem [resolvable:$true] %s35_s10 }
   0x5   :  { %p3194_p1 = scmp.lt.u32.totalorder %s3190_s13, %s3954_s1 }
   0x7   :  { %p3196_p2 = pnand %p3194_p1, %p3191_p0 }
   0x9   :  { %3199 = shalt.err (!%p3196_p2)
}
   0xa   :  { %s3200_s18 = scalar_lea.vmem %s36_s10, 4096  ;;  %p3205_p4 = scmp.lt.s32.totalorder %s36_s10, %s36_s10 }
   0xb   :  { %p3201_p3 = scmp.ne.s32.totalorder %s36_s10, %s3200_s18  ;;  %p3206_p5 = scmp.lt.s32.totalorder %s3200_s18, %s3200_s18 }
   0xd   :  { %p3207_p6 = por %p3206_p5, %p3205_p4 }
   0xf   :  { %p3208_p7 = pnand %p3207_p6, %p3201_p3 }
  0x11   :  { %3211 = shalt.err (!%p3208_p7)
}
  0x12   :  { %s3331_s19 = smov 256   ;;  %s3332_s20 = smov 16  }
  0x13   :  { %41 = dma.hbm_to_vmem [thread:$0]  %s3954_s1, 4096, %s36_s10, [#allocation6], %s3331_s19, %s3331_s19, %s3332_s20  }
  0x14   :  { %s3333_s23 = smov [#allocation8]   ;;  %s3334_s25 = smov [#allocation2]  }
  0x15   :  { %s63_s24 = sshll.u32 %s3333_s23, 4  ;;  %s23_s26 = sshll.u32 %s3334_s25, 4  ;;  %s64_s24 = int_to_ptr.vmem [resolvable:$true] %s63_s24  ;;  %s24_s26 = int_to_ptr.vmem [resolvable:$true] %s23_s26 }
  0x16   :  { %s3212_s29 = scalar_lea.hbm %s3958_s5, 2048 }
  0x17   :  { %p3213_p8 = scmp.ne.s32.totalorder %s3958_s5, %s3212_s29  ;;  %p3216_p9 = scmp.lt.u32.totalorder %s3212_s29, %s3958_s5 }
  0x19   :  { %p3218_p10 = pnand %p3216_p9, %p3213_p8 }
  0x1b   :  { %3221 = shalt.err (!%p3218_p10)
}
  0x1c   :  { %s3222_s1 = scalar_lea.vmem %s64_s24, 2048  ;;  %p3227_p12 = scmp.lt.s32.totalorder %s64_s24, %s64_s24 }
  0x1d   :  { %p3223_p11 = scmp.ne.s32.totalorder %s64_s24, %s3222_s1  ;;  %p3228_p13 = scmp.lt.s32.totalorder %s3222_s1, %s3222_s1 }
  0x1f   :  { %p3229_p0 = por %p3228_p13, %p3227_p12 }
  0x21   :  { %p3230_p1 = pnand %p3229_p0, %p3223_p11 }
  0x23   :  { %3233 = shalt.err (!%p3230_p1)
}
  0x24   :  { %s3335_s10 = smov 64   ;;  %s3336_s14 = smov 4  }
  0x25   :  { %69 = dma.hbm_to_vmem [thread:$0]  %s3958_s5, 2048, %s64_s24, [#allocation9], %s3335_s10, %s3335_s10, %s3336_s14  }
  0x26   :  { %s3234_s19 = scalar_lea.hbm %s3953_s0, 2048 }
  0x27   :  { %p3235_p2 = scmp.ne.s32.totalorder %s3953_s0, %s3234_s19  ;;  %p3238_p3 = scmp.lt.u32.totalorder %s3234_s19, %s3953_s0 }
  0x29   :  { %p3240_p4 = pnand %p3238_p3, %p3235_p2 }
  0x2b   :  { %3243 = shalt.err (!%p3240_p4)
}
  0x2c   :  { %s3244_s25 = scalar_lea.vmem %s24_s26, 2048  ;;  %p3249_p6 = scmp.lt.s32.totalorder %s24_s26, %s24_s26 }
  0x2d   :  { %p3245_p5 = scmp.ne.s32.totalorder %s24_s26, %s3244_s25  ;;  %p3250_p7 = scmp.lt.s32.totalorder %s3244_s25, %s3244_s25 }
  0x2f   :  { %p3251_p8 = por %p3250_p7, %p3249_p6 }
  0x31   :  { %p3252_p9 = pnand %p3251_p8, %p3245_p5 }
  0x33   :  { %3255 = shalt.err (!%p3252_p9)
}
  0x34   :  { %29 = dma.hbm_to_vmem [thread:$0]  %s3953_s0, 2048, %s24_s26, [#allocation3], %s3335_s10, %s3335_s10, %s3336_s14  }
  0x35   :  { %s3337_s27 = smov [#allocation7]   ;;  %s3256_s11 = scalar_lea.hbm %s3956_s3, 8192 }
  0x36   :  { %s49_s28 = sshll.u32 %s3337_s27, 4  ;;  %p3257_p10 = scmp.ne.s32.totalorder %s3956_s3, %s3256_s11  ;;  %s50_s28 = int_to_ptr.vmem [resolvable:$true] %s49_s28 }
  0x37   :  { %p3260_p11 = scmp.lt.u32.totalorder %s3256_s11, %s3956_s3 }
  0x39   :  { %p3262_p12 = pnand %p3260_p11, %p3257_p10 }
  0x3b   :  { %3265 = shalt.err (!%p3262_p12)
}
  0x3c   :  { %s3266_s16 = scalar_lea.vmem %s50_s28, 8192  ;;  %p3271_p0 = scmp.lt.s32.totalorder %s50_s28, %s50_s28 }
  0x3d   :  { %p3267_p13 = scmp.ne.s32.totalorder %s50_s28, %s3266_s16  ;;  %p3272_p1 = scmp.lt.s32.totalorder %s3266_s16, %s3266_s16 }
  0x3f   :  { %p3273_p2 = por %p3272_p1, %p3271_p0 }
  0x41   :  { %p3274_p3 = pnand %p3273_p2, %p3267_p13 }
  0x43   :  { %3277 = shalt.err (!%p3274_p3)
}
  0x44   :  { %s3338_s0 = smov 128   ;;  %s3339_s26 = smov 8  }
  0x45   :  { %55 = dma.hbm_to_vmem [thread:$0]  %s3956_s3, 8192, %s50_s28, [#allocation6], %s3338_s0, %s3338_s0, %s3339_s26  }
  0x46   :  { %s3340_s19 = smov [#allocation10]   ;;  %s3278_s23 = scalar_lea.hbm %s3960_s7, 1024 }
  0x47   :  { %s77_s20 = sshll.u32 %s3340_s19, 4  ;;  %p3279_p4 = scmp.ne.s32.totalorder %s3960_s7, %s3278_s23  ;;  %s78_s20 = int_to_ptr.vmem [resolvable:$true] %s77_s20 }
  0x48   :  { %p3282_p5 = scmp.lt.u32.totalorder %s3278_s23, %s3960_s7 }
  0x4a   :  { %p3284_p6 = pnand %p3282_p5, %p3279_p4 }
  0x4c   :  { %3287 = shalt.err (!%p3284_p6)
}
  0x4d   :  { %s3288_s29 = scalar_lea.vmem %s78_s20, 1024  ;;  %p3293_p8 = scmp.lt.s32.totalorder %s78_s20, %s78_s20 }
  0x4e   :  { %p3289_p7 = scmp.ne.s32.totalorder %s78_s20, %s3288_s29  ;;  %p3294_p9 = scmp.lt.s32.totalorder %s3288_s29, %s3288_s29 }
  0x50   :  { %p3295_p10 = por %p3294_p9, %p3293_p8 }
  0x52   :  { %p3296_p11 = pnand %p3295_p10, %p3289_p7 }
  0x54   :  { %3299 = shalt.err (!%p3296_p11)
}
  0x55   :  { %83 = dma.hbm_to_vmem [thread:$0]  %s3960_s7, 1024, %s78_s20, [#allocation9], %s3335_s10, %s3335_s10, %s3336_s14  }
  0x56   :  { %3322 = dma.done.wait [#allocation3], 2048  }
  0x57   :  { %3323 = vsyncadd [#allocation3], 4294965248 }
  0x58   :  { %3324 = dma.done.wait [#allocation6], 12288  }
  0x59   :  { %3325 = vsyncadd [#allocation6], 4294955008 }
  0x5a   :  { %3326 = dma.done.wait [#allocation9], 3072  }
  0x5b   :  { %3327 = vsyncadd [#allocation9], 4294964224  ;;  %v3341_v0 = vmov 0   ;;  %v3006_v1 = vld [vmem:[#allocation5 + $0x4] ss:$16 sps:$4 sm:$0xff]   ;;  %v3474_v23 = vld [vmem:[#allocation2 + $0x8] sm:$0xff]  }
  0x5c   :  { %476 = vmatprep.mubr.bf16.mxu0 %v3341_v0  ;;  %596 = vmatprep.mubr.bf16.mxu1 %v3341_v0  ;;  %v3008_v2 = vld [vmem:[#allocation5] ss:$16 sps:$4 sm:$0xff]   ;;  %v3009_v3 = vld [vmem:[#allocation5 + $0x24] ss:$16 sps:$4 sm:$0xff]   ;;  %v3045_v17 = vld [vmem:[#allocation5 + $0xc] ss:$16 sps:$4 sm:$0xff]  }
  0x5d   :  { %444 = vmatprep.subr.bf16.mxu0 %v3006_v1  ;;  %2849 = vmatprep.subr.bf16.mxu1 %v3006_v1  ;;  %v3011_v4 = vld [vmem:[#allocation5 + $0x20] ss:$16 sps:$4 sm:$0xff]   ;;  %v3012_v5 = vld [vmem:[#allocation5 + $0x44] ss:$16 sps:$4 sm:$0xff]   ;;  %v3043_v20 = vld [vmem:[#allocation5 + $0x8] ss:$16 sps:$4 sm:$0xff]  }
  0x5e   :  { %445 = vmatpush1.bf16.msra.mxu0 %v3008_v2  ;;  %2857 = vmatpush1.bf16.msra.mxu1 %v3008_v2  ;;  %v3014_v6 = vld [vmem:[#allocation5 + $0x40] ss:$16 sps:$4 sm:$0xff]   ;;  %v3015_v7 = vld [vmem:[#allocation5 + $0x64] ss:$16 sps:$4 sm:$0xff]   ;;  %v3048_v21 = vld [vmem:[#allocation5 + $0x2c] ss:$16 sps:$4 sm:$0xff]  }
  0x5f   :  { %446 = vmatprep.subr.bf16.mxu0 %v3009_v3  ;;  %2850 = vmatprep.subr.bf16.mxu1 %v3009_v3  ;;  %v3017_v8 = vld [vmem:[#allocation5 + $0x60] ss:$16 sps:$4 sm:$0xff]   ;;  %v3018_v9 = vld [vmem:[#allocation5 + $0x84] ss:$16 sps:$4 sm:$0xff]   ;;  %v3046_v22 = vld [vmem:[#allocation5 + $0x28] ss:$16 sps:$4 sm:$0xff]  }
  0x60   :  { %v3020_v10 = vld [vmem:[#allocation5 + $0x80] ss:$16 sps:$4 sm:$0xff]   ;;  %v3021_v11 = vld [vmem:[#allocation5 + $0xa4] ss:$16 sps:$4 sm:$0xff]   ;;  %v3052_v24 = vld [vmem:[#allocation5 + $0x4c] ss:$16 sps:$4 sm:$0xff]  }
  0x61   :  { %v3023_v12 = vld [vmem:[#allocation5 + $0xa0] ss:$16 sps:$4 sm:$0xff]   ;;  %v3024_v13 = vld [vmem:[#allocation5 + $0xc4] ss:$16 sps:$4 sm:$0xff]   ;;  %v3477_v25 = vld [vmem:[#allocation2 + $0x68] sm:$0xff]  }
  0x62   :  { %447 = vmatpush1.bf16.msra.mxu0 %v3011_v4  ;;  %2858 = vmatpush1.bf16.msra.mxu1 %v3011_v4  ;;  %v3026_v14 = vld [vmem:[#allocation5 + $0xc0] ss:$16 sps:$4 sm:$0xff]   ;;  %v3027_v15 = vld [vmem:[#allocation5 + $0xe4] ss:$16 sps:$4 sm:$0xff]   ;;  %v3050_v28 = vld [vmem:[#allocation5 + $0x48] ss:$16 sps:$4 sm:$0xff]  }
  0x63   :  { %448 = vmatprep.subr.bf16.mxu0 %v3012_v5  ;;  %2851 = vmatprep.subr.bf16.mxu1 %v3012_v5  ;;  %v3029_v16 = vld [vmem:[#allocation5 + $0xe0] ss:$16 sps:$4 sm:$0xff]   ;;  %v3072_v27 = vld [vmem:[#allocation7 + $0x4] ss:$8 sps:$4 sm:$0xff]   ;;  %v3075_v30 = vld [vmem:[#allocation7 + $0x14] ss:$8 sps:$4 sm:$0xff]  }
  0x64   :  { %v3467_v18 = vld [vmem:[#allocation2] sm:$0xff]   ;;  %v3055_v29 = vld [vmem:[#allocation5 + $0x6c] ss:$16 sps:$4 sm:$0xff]   ;;  %v3073_v31 = vld [vmem:[#allocation7 + $0x10] ss:$8 sps:$4 sm:$0xff]  }
  0x65   :  { %v3469_v19 = vld [vmem:[#allocation2 + $0x60] sm:$0xff]   ;;  %v3053_v32 = vld [vmem:[#allocation5 + $0x68] ss:$16 sps:$4 sm:$0xff]   ;;  %v3059_v34 = vld [vmem:[#allocation5 + $0x8c] ss:$16 sps:$4 sm:$0xff]  }
  0x66   :  { %449 = vmatpush1.bf16.msra.mxu0 %v3014_v6  ;;  %2859 = vmatpush1.bf16.msra.mxu1 %v3014_v6  ;;  %v3070_v26 = vld [vmem:[#allocation7] ss:$8 sps:$4 sm:$0xff]   ;;  %v3078_v33 = vld [vmem:[#allocation7 + $0x24] ss:$8 sps:$4 sm:$0xff]   ;;  %v3483_v35 = vld [vmem:[#allocation2 + $0x10] sm:$0xff]  }
  0x67   :  { %450 = vmatprep.subr.bf16.mxu0 %v3015_v7  ;;  %2852 = vmatprep.subr.bf16.mxu1 %v3015_v7  ;;  %v3485_v36 = vld [vmem:[#allocation2 + $0x70] sm:$0xff]   ;;  %v3057_v37 = vld [vmem:[#allocation5 + $0x88] ss:$16 sps:$4 sm:$0xff]   ;;  %v3062_v38 = vld [vmem:[#allocation5 + $0xac] ss:$16 sps:$4 sm:$0xff]  }
  0x68   :  { %v3076_v39 = vld [vmem:[#allocation7 + $0x20] ss:$8 sps:$4 sm:$0xff]   ;;  %v3081_v40 = vld [vmem:[#allocation7 + $0x34] ss:$8 sps:$4 sm:$0xff]   ;;  %v3079_v43 = vld [vmem:[#allocation7 + $0x30] ss:$8 sps:$4 sm:$0xff]  }
  0x69   :  { %v3060_v41 = vld [vmem:[#allocation5 + $0xa8] ss:$16 sps:$4 sm:$0xff]   ;;  %v3066_v42 = vld [vmem:[#allocation5 + $0xcc] ss:$16 sps:$4 sm:$0xff]   ;;  %v3034_v52 = vld [vmem:[#allocation2 + $0x20] sm:$0xff]  }
  0x6a   :  { %451 = vmatpush1.bf16.msra.mxu0 %v3017_v8  ;;  %2860 = vmatpush1.bf16.msra.mxu1 %v3017_v8  ;;  %v3491_v44 = vld [vmem:[#allocation2 + $0x18] sm:$0xff]   ;;  %v3082_v48 = vld [vmem:[#allocation7 + $0x40] ss:$8 sps:$4 sm:$0xff]   ;;  %v3084_v50 = vld [vmem:[#allocation7 + $0x44] ss:$8 sps:$4 sm:$0xff]  }
  0x6b   :  { %452 = vmatprep.subr.bf16.mxu0 %v3018_v9  ;;  %2853 = vmatprep.subr.bf16.mxu1 %v3018_v9  ;;  %v3493_v45 = vld [vmem:[#allocation2 + $0x78] sm:$0xff]   ;;  %v3090_v54 = vld [vmem:[#allocation7 + $0x64] ss:$8 sps:$4 sm:$0xff]   ;;  %v3088_v55 = vld [vmem:[#allocation7 + $0x60] ss:$8 sps:$4 sm:$0xff]  }
  0x6c   :  { %v3064_v46 = vld [vmem:[#allocation5 + $0xc8] ss:$16 sps:$4 sm:$0xff]   ;;  %v3069_v47 = vld [vmem:[#allocation5 + $0xec] ss:$16 sps:$4 sm:$0xff]   ;;  %v3036_v62 = vld [vmem:[#allocation2 + $0x30] sm:$0xff]  }
  0x6d   :  { %v3067_v49 = vld [vmem:[#allocation5 + $0xe8] ss:$16 sps:$4 sm:$0xff]   ;;  %v3087_v51 = vld [vmem:[#allocation7 + $0x54] ss:$8 sps:$4 sm:$0xff]   ;;  %v3096_v59 = vld [vmem:[#allocation7 + $0x84] ss:$8 sps:$4 sm:$0xff]  }
  0x6e   :  { %453 = vmatpush1.bf16.msra.mxu0 %v3020_v10  ;;  %2861 = vmatpush1.bf16.msra.mxu1 %v3020_v10  ;;  %v3085_v53 = vld [vmem:[#allocation7 + $0x50] ss:$8 sps:$4 sm:$0xff]   ;;  %v3093_v56 = vld [vmem:[#allocation7 + $0x74] ss:$8 sps:$4 sm:$0xff]   ;;  %v3035_v57 = vld [vmem:[#allocation2 + $0x28] sm:$0xff]  }
  0x6f   :  { %454 = vmatprep.subr.bf16.mxu0 %v3021_v11  ;;  %2854 = vmatprep.subr.bf16.mxu1 %v3021_v11  ;;  %v3091_v58 = vld [vmem:[#allocation7 + $0x70] ss:$8 sps:$4 sm:$0xff]   ;;  %v3094_v60 = vld [vmem:[#allocation7 + $0x80] ss:$8 sps:$4 sm:$0xff]   ;;  %v3099_v61 = vld [vmem:[#allocation7 + $0x94] ss:$8 sps:$4 sm:$0xff]  }
  0x70   :  { %v3097_v63 = vld [vmem:[#allocation7 + $0x90] ss:$8 sps:$4 sm:$0xff]   ;;  %v3102_v1 = vld [vmem:[#allocation7 + $0xa4] ss:$8 sps:$4 sm:$0xff]   ;;  %v3100_v2 = vld [vmem:[#allocation7 + $0xa0] ss:$8 sps:$4 sm:$0xff]  }
  0x71   :  { %v3105_v3 = vld [vmem:[#allocation7 + $0xb4] ss:$8 sps:$4 sm:$0xff]   ;;  %v3103_v5 = vld [vmem:[#allocation7 + $0xb0] ss:$8 sps:$4 sm:$0xff]   ;;  %v3108_v6 = vld [vmem:[#allocation7 + $0xc4] ss:$8 sps:$4 sm:$0xff]  }
  0x72   :  { %455 = vmatpush1.bf16.msra.mxu0 %v3023_v12  ;;  %2862 = vmatpush1.bf16.msra.mxu1 %v3023_v12  ;;  %v3037_v4 = vld [vmem:[#allocation2 + $0x38] sm:$0xff]   ;;  %v3106_v7 = vld [vmem:[#allocation7 + $0xc0] ss:$8 sps:$4 sm:$0xff]   ;;  %v3114_v11 = vld [vmem:[#allocation7 + $0xe4] ss:$8 sps:$4 sm:$0xff]  }
  0x73   :  { %456 = vmatprep.subr.bf16.mxu0 %v3024_v13  ;;  %2855 = vmatprep.subr.bf16.mxu1 %v3024_v13  ;;  %v3111_v8 = vld [vmem:[#allocation7 + $0xd4] ss:$8 sps:$4 sm:$0xff]   ;;  %v3038_v9 = vld [vmem:[#allocation2 + $0x40] sm:$0xff]   ;;  %v3109_v10 = vld [vmem:[#allocation7 + $0xd0] ss:$8 sps:$4 sm:$0xff]  }
  0x74   :  { %v3112_v12 = vld [vmem:[#allocation7 + $0xe0] ss:$8 sps:$4 sm:$0xff]  }
  0x75   :  { %v3039_v13 = vld [vmem:[#allocation2 + $0x48] sm:$0xff]  }
  0x76   :  { %457 = vmatpush1.bf16.msra.mxu0 %v3026_v14  ;;  %2863 = vmatpush1.bf16.msra.mxu1 %v3026_v14  ;;  %v3040_v14 = vld [vmem:[#allocation2 + $0x50] sm:$0xff]  }
  0x77   :  { %458 = vmatprep.subr.bf16.mxu0 %v3027_v15  ;;  %2856 = vmatprep.subr.bf16.mxu1 %v3027_v15  ;;  %v3041_v15 = vld [vmem:[#allocation2 + $0x58] sm:$0xff]  }
  0x7a   :  { %459 = vmatpush1.bf16.msra.mxu0 %v3029_v16  ;;  %2864 = vmatpush1.bf16.msra.mxu1 %v3029_v16  ;;  %v3117_v16 = vld [vmem:[#allocation7 + $0xf4] ss:$8 sps:$4 sm:$0xff]  }
  0x7b   :  { %637 = vmatprep.subr.bf16.mxu1 %v3045_v17  ;;  %1418 = vmatprep.subr.bf16.mxu0 %v3072_v27  ;;  %v3115_v17 = vld [vmem:[#allocation7 + $0xf0] ss:$8 sps:$4 sm:$0xff]  }
  0x7d   :  { %477 = vmatmul.mubr.bf16.vlgmr.msra.gmra.mrb[0].mxu0 %v3467_v18  ;;  %597 = vmatmul.mubr.bf16.vlgmr.msra.gmra.mrb[0].mxu1 %v3469_v19 }
  0x7e   :  { %486 = vmatprep.mubr.bf16.mxu0 %v3341_v0  ;;  %638 = vmatpush1.bf16.msra.mxu1 %v3043_v20  ;;  %v168_v20 = vlaneseq }
  0x7f   :  { %639 = vmatprep.subr.bf16.mxu1 %v3048_v21  ;;  %606 = vmatprep.mubr.bf16.mxu1 %v3341_v0 }
  0x80   :  { %1419 = vmatpush1.bf16.msra.mxu0 %v3070_v26  ;;  %v3529_v21 = vshrl.u32 %v168_v20, 7 }
  0x81   :  { %1420 = vmatprep.subr.bf16.mxu0 %v3075_v30 }
  0x82   :  { %640 = vmatpush1.bf16.msra.mxu1 %v3046_v22  ;;  %v170_v22 = vsub.s32 0, %v3529_v21 }
  0x83   :  { %641 = vmatprep.subr.bf16.mxu1 %v3052_v24 }
  0x84   :  { %1421 = vmatpush1.bf16.msra.mxu0 %v3073_v31 }
  0x85   :  { %487 = vmatmul.mubr.bf16.gmra.mrb[4].mxu0 %v3474_v23  ;;  %607 = vmatmul.mubr.bf16.gmra.mrb[4].mxu1 %v3477_v25 }
  0x86   :  { %496 = vmatprep.mubr.bf16.mxu0 %v3341_v0  ;;  %642 = vmatpush1.bf16.msra.mxu1 %v3050_v28 }
  0x87   :  { %643 = vmatprep.subr.bf16.mxu1 %v3055_v29  ;;  %616 = vmatprep.mubr.bf16.mxu1 %v3341_v0 }
  0x88   :  { %1422 = vmatprep.subr.bf16.mxu0 %v3078_v33 }
  0x89   :  { %1423 = vmatpush1.bf16.msra.mxu0 %v3076_v39 }
  0x8a   :  { %644 = vmatpush1.bf16.msra.mxu1 %v3053_v32  ;;  %1424 = vmatprep.subr.bf16.mxu0 %v3081_v40 }
  0x8b   :  { %645 = vmatprep.subr.bf16.mxu1 %v3059_v34 }
  0x8d   :  { %497 = vmatmul.mubr.bf16.gmra.mrb[8].mxu0 %v3483_v35  ;;  %617 = vmatmul.mubr.bf16.gmra.mrb[8].mxu1 %v3485_v36 }
  0x8e   :  { %506 = vmatprep.mubr.bf16.mxu0 %v3341_v0  ;;  %646 = vmatpush1.bf16.msra.mxu1 %v3057_v37 }
  0x8f   :  { %647 = vmatprep.subr.bf16.mxu1 %v3062_v38  ;;  %626 = vmatprep.mubr.bf16.mxu1 %v3341_v0 }
  0x90   :  { %1425 = vmatpush1.bf16.msra.mxu0 %v3079_v43 }
  0x91   :  { %1426 = vmatprep.subr.bf16.mxu0 %v3084_v50 }
  0x92   :  { %648 = vmatpush1.bf16.msra.mxu1 %v3060_v41 }
  0x93   :  { %649 = vmatprep.subr.bf16.mxu1 %v3066_v42 }
  0x94   :  { %1427 = vmatpush1.bf16.msra.mxu0 %v3082_v48 }
  0x95   :  { %507 = vmatmul.mubr.bf16.gmra.mrb[12].mxu0 %v3491_v44  ;;  %627 = vmatmul.mubr.bf16.gmra.mrb[12].mxu1 %v3493_v45 }
  0x96   :  { %516 = vmatprep.mubr.bf16.mxu0 %v3341_v0  ;;  %650 = vmatpush1.bf16.msra.mxu1 %v3064_v46 }
  0x97   :  { %651 = vmatprep.subr.bf16.mxu1 %v3069_v47  ;;  %669 = vmatprep.mubr.bf16.mxu1 %v3341_v0 }
  0x98   :  { %1428 = vmatprep.subr.bf16.mxu0 %v3087_v51 }
  0x99   :  { %1429 = vmatpush1.bf16.msra.mxu0 %v3085_v53  ;;  %v3118_v53 = vld [vmem:[#allocation7 + $0x100] ss:$8 sps:$4 sm:$0xff]  }
  0x9a   :  { %652 = vmatpush1.bf16.msra.mxu1 %v3067_v49  ;;  %1430 = vmatprep.subr.bf16.mxu0 %v3090_v54 }
  0x9d   :  { %517 = vmatmul.mubr.bf16.gmra.mrb[16].mxu0 %v3034_v52  ;;  %670 = vmatmul.mubr.bf16.vlgmr.msra.gmra.mrb[16].mxu1 %v3467_v18  ;;  %v3120_v18 = vld [vmem:[#allocation7 + $0x104] ss:$8 sps:$4 sm:$0xff]  }
  0x9e   :  { %526 = vmatprep.mubr.bf16.mxu0 %v3341_v0  ;;  %679 = vmatprep.mubr.bf16.mxu1 %v3341_v0 }
  0x9f   :  { %1431 = vmatpush1.bf16.msra.mxu0 %v3088_v55 }
  0xa0   :  { %1432 = vmatprep.subr.bf16.mxu0 %v3093_v56 }
  0xa3   :  { %1433 = vmatpush1.bf16.msra.mxu0 %v3091_v58  ;;  %v3123_v58 = vld [vmem:[#allocation7 + $0x114] ss:$8 sps:$4 sm:$0xff]  }
  0xa4   :  { %1434 = vmatprep.subr.bf16.mxu0 %v3096_v59 }
  0xa5   :  { %527 = vmatmul.mubr.bf16.gmra.mrb[20].mxu0 %v3035_v57  ;;  %680 = vmatmul.mubr.bf16.gmra.mrb[20].mxu1 %v3474_v23  ;;  %v174_v23 = vsub.s32 1, %v3529_v21 }
  0xa6   :  { %536 = vmatprep.mubr.bf16.mxu0 %v3341_v0  ;;  %689 = vmatprep.mubr.bf16.mxu1 %v3341_v0 }
  0xa7   :  { %1435 = vmatpush1.bf16.msra.mxu0 %v3094_v60 }
  0xa8   :  { %1436 = vmatprep.subr.bf16.mxu0 %v3099_v61 }
  0xab   :  { %1437 = vmatpush1.bf16.msra.mxu0 %v3097_v63 }
  0xac   :  { %1438 = vmatprep.subr.bf16.mxu0 %v3102_v1 }
  0xad   :  { %537 = vmatmul.mubr.bf16.gmra.mrb[24].mxu0 %v3036_v62  ;;  %690 = vmatmul.mubr.bf16.gmra.mrb[24].mxu1 %v3483_v35 }
  0xae   :  { %546 = vmatprep.mubr.bf16.mxu0 %v3341_v0  ;;  %699 = vmatprep.mubr.bf16.mxu1 %v3341_v0 }
  0xaf   :  { %1439 = vmatpush1.bf16.msra.mxu0 %v3100_v2 }
  0xb0   :  { %1440 = vmatprep.subr.bf16.mxu0 %v3105_v3 }
  0xb3   :  { %1441 = vmatpush1.bf16.msra.mxu0 %v3103_v5 }
  0xb4   :  { %1442 = vmatprep.subr.bf16.mxu0 %v3108_v6 }
  0xb5   :  { %547 = vmatmul.mubr.bf16.gmra.mrb[28].mxu0 %v3037_v4  ;;  %700 = vmatmul.mubr.bf16.gmra.mrb[28].mxu1 %v3491_v44 }
  0xb6   :  { %556 = vmatprep.mubr.bf16.mxu0 %v3341_v0  ;;  %709 = vmatprep.mubr.bf16.mxu1 %v3341_v0 }
  0xb7   :  { %1443 = vmatpush1.bf16.msra.mxu0 %v3106_v7 }
  0xb8   :  { %1444 = vmatprep.subr.bf16.mxu0 %v3111_v8  ;;  %v3121_v8 = vld [vmem:[#allocation7 + $0x110] ss:$8 sps:$4 sm:$0xff]  }
  0xbb   :  { %1445 = vmatpush1.bf16.msra.mxu0 %v3109_v10 }
  0xbc   :  { %1446 = vmatprep.subr.bf16.mxu0 %v3114_v11 }
  0xbd   :  { %557 = vmatmul.mubr.bf16.gmra.mrb[32].mxu0 %v3038_v9  ;;  %710 = vmatmul.mubr.bf16.gmra.mrb[32].mxu1 %v3034_v52 }
  0xbe   :  { %566 = vmatprep.mubr.bf16.mxu0 %v3341_v0  ;;  %719 = vmatprep.mubr.bf16.mxu1 %v3341_v0 }
  0xbf   :  { %1447 = vmatpush1.bf16.msra.mxu0 %v3112_v12 }
  0xc0   :  { %1448 = vmatprep.subr.bf16.mxu0 %v3117_v16 }
  0xc3   :  { %1449 = vmatpush1.bf16.msra.mxu0 %v3115_v17 }
  0xc4   :  { %1611 = vmatprep.subr.bf16.mxu0 %v3120_v18 }
  0xc5   :  { %567 = vmatmul.mubr.bf16.gmra.mrb[36].mxu0 %v3039_v13  ;;  %720 = vmatmul.mubr.bf16.gmra.mrb[36].mxu1 %v3035_v57 }
  0xc6   :  { %576 = vmatprep.mubr.bf16.mxu0 %v3341_v0  ;;  %729 = vmatprep.mubr.bf16.mxu1 %v3341_v0 }
  0xcd   :  { %577 = vmatmul.mubr.bf16.gmra.mrb[40].mxu0 %v3040_v14  ;;  %730 = vmatmul.mubr.bf16.gmra.mrb[40].mxu1 %v3036_v62 }
  0xce   :  { %586 = vmatprep.mubr.bf16.mxu0 %v3341_v0  ;;  %739 = vmatprep.mubr.bf16.mxu1 %v3341_v0 }
  0xd5   :  { %587 = vmatmul.mubr.bf16.gmra.mrb[44].mxu0 %v3041_v15  ;;  %740 = vmatmul.mubr.bf16.gmra.mrb[44].mxu1 %v3037_v4 }
  0xd6   :  { %749 = vmatprep.mubr.bf16.mxu1 %v3341_v0 }
  0xdd   :  { %750 = vmatmul.mubr.bf16.gmra.mrb[48].mxu1 %v3038_v9 }
  0xde   :  { %759 = vmatprep.mubr.bf16.mxu1 %v3341_v0 }
  0xe5   :  { %760 = vmatmul.mubr.bf16.gmra.mrb[52].mxu1 %v3039_v13  ;;  %v3126_v13 = vld [vmem:[#allocation7 + $0x124] ss:$8 sps:$4 sm:$0xff]  }
  0xe6   :  { %769 = vmatprep.mubr.bf16.mxu1 %v3341_v0 }
  0xed   :  { %770 = vmatmul.mubr.bf16.gmra.mrb[56].mxu1 %v3040_v14 }
  0xee   :  { %779 = vmatprep.mubr.bf16.mxu1 %v3341_v0 }
  0xf5   :  { %780 = vmatmul.mubr.bf16.gmra.mrb[60].mxu1 %v3041_v15 }
  0xf6   :  { %789 = vmatprep.mubr.bf16.mxu1 %v3341_v0 }
  0xfd   :  { %790 = vmatmul.mubr.bf16.gmra.mrb[64].mxu1 %v3469_v19  ;;  %v3535_v19 = vld [vmem:[%s3955_s2] sm:$0xf] }
  0xfe   :  { %799 = vmatprep.mubr.bf16.mxu1 %v3341_v0  ;;  %v3541_v24 = vrot.slane %v3535_v19, %v170_v22 }
 0x105   :  { %800 = vmatmul.mubr.bf16.gmra.mrb[68].mxu1 %v3477_v25 }
 0x106   :  { %809 = vmatprep.mubr.bf16.mxu1 %v3341_v0 }
 0x10d   :  { %810 = vmatmul.mubr.bf16.gmra.mrb[72].mxu1 %v3485_v36 }
 0x10e   :  { %819 = vmatprep.mubr.bf16.mxu1 %v3341_v0  ;;  %v3546_v0 = vrot.slane %v3535_v19, %v174_v23 }
 0x115   :  { %820 = vmatmul.mubr.bf16.gmra.mrb[76].mxu1 %v3493_v45 }
 0x150   :  { %v478_v25 = vpop.f32.mrb[0].mxu0  ;;  %v598_v26 = vpop.f32.mrb[0].mxu1 }
 0x151   :  { %v479_v27 = vadd.f32 %v478_v25, %v3541_v24  ;;  %v480_v28 = vpop.f32.mrb[1].mxu0  ;;  %v599_v29 = vadd.f32 %v598_v26, %v3541_v24  ;;  %v600_v30 = vpop.f32.mrb[1].mxu1 }
 0x152   :  { %v481_v31 = vadd.f32 %v480_v28, %v3546_v0  ;;  %v482_v32 = vpop.f32.mrb[2].mxu0  ;;  %v601_v33 = vadd.f32 %v600_v30, %v3546_v0  ;;  %v602_v34 = vpop.f32.mrb[2].mxu1 }
 0x153   :  { %v483_v35 = vadd.f32 %v482_v32, %v3541_v24  ;;  %v484_v36 = vpop.f32.mrb[3].mxu0  ;;  %v926_v37 = vmax.f32 %v599_v29, 0.0  ;;  %v603_v38 = vadd.f32 %v602_v34, %v3541_v24  ;;  %v604_v39 = vpop.f32.mrb[3].mxu1  ;;  %v830_v43 = vmax.f32 %v479_v27, 0.0  ;;  %v3124_v27 = vld [vmem:[#allocation7 + $0x120] ss:$8 sps:$4 sm:$0xff]  }
 0x154   :  { %v485_v40 = vadd.f32 %v484_v36, %v3546_v0  ;;  %v927_v41 = vmax.f32 %v601_v33, 0.0  ;;  %v605_v42 = vadd.f32 %v604_v39, %v3546_v0  ;;  %v831_v46 = vmax.f32 %v481_v31, 0.0  ;;  %v3129_v32 = vld [vmem:[#allocation7 + $0x134] ss:$8 sps:$4 sm:$0xff]  }
 0x155   :  { %v834_v44 = vmax.f32 %v483_v35, 0.0  ;;  %v930_v45 = vmax.f32 %v603_v38, 0.0 }
 0x156   :  { %v835_v47 = vmax.f32 %v485_v40, 0.0  ;;  %v931_v48 = vmax.f32 %v605_v42, 0.0 }
 0x157   :  { %v958_v49 = vpack.c.bf16 %v834_v44, %v830_v43  ;;  %v3556_v50 = vpack.c.bf16 %v930_v45, %v926_v37  ;;  %v3127_v45 = vld [vmem:[#allocation7 + $0x130] ss:$8 sps:$4 sm:$0xff]  }
 0x158   :  { %v959_v51 = vpack.c.bf16 %v835_v47, %v831_v46  ;;  %v488_v52 = vpop.f32.mrb[4].mxu0  ;;  %v3558_v54 = vpack.c.bf16 %v931_v48, %v927_v41  ;;  %v608_v55 = vpop.f32.mrb[4].mxu1 }
 0x159   :  { %v489_v56 = vadd.f32 %v488_v52, %v3541_v24  ;;  %v490_v57 = vpop.f32.mrb[5].mxu0  ;;  %v609_v59 = vadd.f32 %v608_v55, %v3541_v24  ;;  %v610_v60 = vpop.f32.mrb[5].mxu1 }
 0x15a   :  { %v491_v61 = vadd.f32 %v490_v57, %v3546_v0  ;;  %v492_v62 = vpop.f32.mrb[6].mxu0  ;;  %1450 = vmatprep.mubr.bf16.mxu0 %v959_v51  ;;  %v611_v63 = vadd.f32 %v610_v60, %v3546_v0  ;;  %v612_v1 = vpop.f32.mrb[6].mxu1  ;;  %v3132_v51 = vld [vmem:[#allocation7 + $0x144] ss:$8 sps:$4 sm:$0xff]  }
 0x15b   :  { %v493_v2 = vadd.f32 %v492_v62, %v3541_v24  ;;  %v494_v3 = vpop.f32.mrb[7].mxu0  ;;  %1451 = vmatmul.mubr.bf16.vlgmr.msra.gmra.mrb[48].mxu0 %v958_v49  ;;  %v934_v4 = vmax.f32 %v609_v59, 0.0  ;;  %v613_v5 = vadd.f32 %v612_v1, %v3541_v24  ;;  %v614_v6 = vpop.f32.mrb[7].mxu1  ;;  %v838_v11 = vmax.f32 %v489_v56, 0.0 }
 0x15c   :  { %v495_v7 = vadd.f32 %v494_v3, %v3546_v0  ;;  %1612 = vmatpush1.bf16.msra.mxu0 %v3118_v53  ;;  %v935_v9 = vmax.f32 %v611_v63, 0.0  ;;  %v615_v10 = vadd.f32 %v614_v6, %v3546_v0  ;;  %v839_v15 = vmax.f32 %v491_v61, 0.0  ;;  %v3130_v61 = vld [vmem:[#allocation7 + $0x140] ss:$8 sps:$4 sm:$0xff]   ;;  %v3135_v3 = vld [vmem:[#allocation7 + $0x154] ss:$8 sps:$4 sm:$0xff]  }
 0x15d   :  { %v842_v12 = vmax.f32 %v493_v2, 0.0  ;;  %1613 = vmatprep.subr.bf16.mxu0 %v3123_v58  ;;  %v938_v14 = vmax.f32 %v613_v5, 0.0  ;;  %v178_v6 = vsub.s32 2, %v3529_v21 }
 0x15e   :  { %v843_v16 = vmax.f32 %v495_v7, 0.0  ;;  %v939_v17 = vmax.f32 %v615_v10, 0.0 }
 0x15f   :  { %v962_v18 = vpack.c.bf16 %v842_v12, %v838_v11  ;;  %v3568_v20 = vpack.c.bf16 %v938_v14, %v934_v4  ;;  %v182_v11 = vsub.s32 3, %v3529_v21 }
 0x160   :  { %v963_v25 = vpack.c.bf16 %v843_v16, %v839_v15  ;;  %v498_v26 = vpop.f32.mrb[8].mxu0  ;;  %1614 = vmatpush1.bf16.msra.mxu0 %v3121_v8  ;;  %v3570_v28 = vpack.c.bf16 %v939_v17, %v935_v9  ;;  %v618_v29 = vpop.f32.mrb[8].mxu1 }
 0x161   :  { %v499_v30 = vadd.f32 %v498_v26, %v3541_v24  ;;  %v500_v31 = vpop.f32.mrb[9].mxu0  ;;  %1615 = vmatprep.subr.bf16.mxu0 %v3126_v13  ;;  %v619_v33 = vadd.f32 %v618_v29, %v3541_v24  ;;  %v620_v34 = vpop.f32.mrb[9].mxu1 }
 0x162   :  { %v501_v35 = vadd.f32 %v500_v31, %v3546_v0  ;;  %v502_v36 = vpop.f32.mrb[10].mxu0  ;;  %1460 = vmatprep.mubr.bf16.mxu0 %v963_v25  ;;  %v621_v37 = vadd.f32 %v620_v34, %v3546_v0  ;;  %v622_v38 = vpop.f32.mrb[10].mxu1 }
 0x163   :  { %v503_v39 = vadd.f32 %v502_v36, %v3541_v24  ;;  %v504_v40 = vpop.f32.mrb[11].mxu0  ;;  %1461 = vmatmul.mubr.bf16.gmra.mrb[52].mxu0 %v962_v18  ;;  %v942_v41 = vmax.f32 %v619_v33, 0.0  ;;  %v623_v42 = vadd.f32 %v622_v38, %v3541_v24  ;;  %v624_v43 = vpop.f32.mrb[11].mxu1  ;;  %v846_v48 = vmax.f32 %v499_v30, 0.0  ;;  %v3133_v18 = vld [vmem:[#allocation7 + $0x150] ss:$8 sps:$4 sm:$0xff]  }
 0x164   :  { %v505_v44 = vadd.f32 %v504_v40, %v3546_v0  ;;  %1616 = vmatpush1.bf16.msra.mxu0 %v3124_v27  ;;  %v943_v46 = vmax.f32 %v621_v37, 0.0  ;;  %v625_v47 = vadd.f32 %v624_v43, %v3546_v0  ;;  %v847_v53 = vmax.f32 %v501_v35, 0.0  ;;  %v3138_v30 = vld [vmem:[#allocation7 + $0x164] ss:$8 sps:$4 sm:$0xff]  }
 0x165   :  { %v850_v49 = vmax.f32 %v503_v39, 0.0  ;;  %1617 = vmatprep.subr.bf16.mxu0 %v3129_v32  ;;  %v946_v52 = vmax.f32 %v623_v42, 0.0  ;;  %v3595_v32 = vrot.slane %v3535_v19, %v178_v6  ;;  %v3598_v36 = vrot.slane %v3535_v19, %v182_v11 }
 0x166   :  { %v851_v55 = vmax.f32 %v505_v44, 0.0  ;;  %v947_v56 = vmax.f32 %v625_v47, 0.0 }
 0x167   :  { %v966_v57 = vpack.c.bf16 %v850_v49, %v846_v48  ;;  %v3580_v58 = vpack.c.bf16 %v946_v52, %v942_v41  ;;  %v3136_v41 = vld [vmem:[#allocation7 + $0x160] ss:$8 sps:$4 sm:$0xff]  }
 0x168   :  { %v967_v59 = vpack.c.bf16 %v851_v55, %v847_v53  ;;  %v508_v60 = vpop.f32.mrb[12].mxu0  ;;  %1618 = vmatpush1.bf16.msra.mxu0 %v3127_v45  ;;  %v3582_v62 = vpack.c.bf16 %v947_v56, %v943_v46  ;;  %v628_v63 = vpop.f32.mrb[12].mxu1  ;;  %v3141_v46 = vld [vmem:[#allocation7 + $0x174] ss:$8 sps:$4 sm:$0xff]  }
 0x169   :  { %v509_v1 = vadd.f32 %v508_v60, %v3541_v24  ;;  %v510_v2 = vpop.f32.mrb[13].mxu0  ;;  %1619 = vmatprep.subr.bf16.mxu0 %v3132_v51  ;;  %v629_v4 = vadd.f32 %v628_v63, %v3541_v24  ;;  %v630_v5 = vpop.f32.mrb[13].mxu1 }
 0x16a   :  { %v511_v7 = vadd.f32 %v510_v2, %v3546_v0  ;;  %v512_v8 = vpop.f32.mrb[14].mxu0  ;;  %1470 = vmatprep.mubr.bf16.mxu0 %v967_v59  ;;  %v631_v9 = vadd.f32 %v630_v5, %v3546_v0  ;;  %v632_v10 = vpop.f32.mrb[14].mxu1 }
 0x16b   :  { %v513_v12 = vadd.f32 %v512_v8, %v3541_v24  ;;  %v514_v13 = vpop.f32.mrb[15].mxu0  ;;  %1471 = vmatmul.mubr.bf16.gmra.mrb[56].mxu0 %v966_v57  ;;  %v950_v14 = vmax.f32 %v629_v4, 0.0  ;;  %v633_v15 = vadd.f32 %v632_v10, %v3541_v24  ;;  %v634_v16 = vpop.f32.mrb[15].mxu1  ;;  %v854_v27 = vmax.f32 %v509_v1, 0.0  ;;  %v3144_v4 = vld [vmem:[#allocation7 + $0x184] ss:$8 sps:$4 sm:$0xff]  }
 0x16c   :  { %v515_v17 = vadd.f32 %v514_v13, %v3546_v0  ;;  %1620 = vmatpush1.bf16.msra.mxu0 %v3130_v61  ;;  %v951_v25 = vmax.f32 %v631_v9, 0.0  ;;  %v635_v26 = vadd.f32 %v634_v16, %v3546_v0  ;;  %v855_v33 = vmax.f32 %v511_v7, 0.0  ;;  %v3139_v61 = vld [vmem:[#allocation7 + $0x170] ss:$8 sps:$4 sm:$0xff]   ;;  %v3142_v13 = vld [vmem:[#allocation7 + $0x180] ss:$8 sps:$4 sm:$0xff]  }
 0x16d   :  { %v858_v29 = vmax.f32 %v513_v12, 0.0  ;;  %1621 = vmatprep.subr.bf16.mxu0 %v3135_v3  ;;  %v954_v31 = vmax.f32 %v633_v15, 0.0 }
 0x16e   :  { %v859_v34 = vmax.f32 %v515_v17, 0.0  ;;  %v955_v35 = vmax.f32 %v635_v26, 0.0 }
 0x16f   :  { %v970_v37 = vpack.c.bf16 %v858_v29, %v854_v27  ;;  %v3600_v38 = vpack.c.bf16 %v954_v31, %v950_v14 }
 0x170   :  { %v971_v39 = vpack.c.bf16 %v859_v34, %v855_v33  ;;  %v518_v40 = vpop.f32.mrb[16].mxu0  ;;  %1622 = vmatpush1.bf16.msra.mxu0 %v3133_v18  ;;  %v3602_v42 = vpack.c.bf16 %v955_v35, %v951_v25  ;;  %v671_v43 = vpop.f32.mrb[16].mxu1  ;;  %v3147_v18 = vld [vmem:[#allocation7 + $0x194] ss:$8 sps:$4 sm:$0xff]  }
 0x171   :  { %v519_v44 = vadd.f32 %v518_v40, %v3541_v24  ;;  %v520_v45 = vpop.f32.mrb[17].mxu0  ;;  %1623 = vmatprep.subr.bf16.mxu0 %v3138_v30  ;;  %v672_v47 = vadd.f32 %v671_v43, %v3595_v32  ;;  %v673_v48 = vpop.f32.mrb[17].mxu1 }
 0x172   :  { %v521_v19 = vadd.f32 %v520_v45, %v3546_v0  ;;  %v522_v49 = vpop.f32.mrb[18].mxu0  ;;  %1480 = vmatprep.mubr.bf16.mxu0 %v971_v39  ;;  %v674_v51 = vadd.f32 %v673_v48, %v3598_v36  ;;  %v675_v52 = vpop.f32.mrb[18].mxu1 }
 0x173   :  { %v523_v53 = vadd.f32 %v522_v49, %v3541_v24  ;;  %v524_v55 = vpop.f32.mrb[19].mxu0  ;;  %1481 = vmatmul.mubr.bf16.gmra.mrb[60].mxu0 %v970_v37  ;;  %v832_v56 = vmax.f32 %v672_v47, 0.0  ;;  %v676_v57 = vadd.f32 %v675_v52, %v3595_v32  ;;  %v677_v59 = vpop.f32.mrb[19].mxu1  ;;  %v862_v2 = vmax.f32 %v519_v44, 0.0  ;;  %v3150_v47 = vld [vmem:[#allocation7 + $0x1a4] ss:$8 sps:$4 sm:$0xff]  }
 0x174   :  { %v525_v60 = vadd.f32 %v524_v55, %v3546_v0  ;;  %1624 = vmatpush1.bf16.msra.mxu0 %v3136_v41  ;;  %v833_v63 = vmax.f32 %v674_v51, 0.0  ;;  %v678_v1 = vadd.f32 %v677_v59, %v3598_v36  ;;  %v863_v6 = vmax.f32 %v521_v19, 0.0  ;;  %v3145_v41 = vld [vmem:[#allocation7 + $0x190] ss:$8 sps:$4 sm:$0xff]  }
 0x175   :  { %v866_v3 = vmax.f32 %v523_v53, 0.0  ;;  %1625 = vmatprep.subr.bf16.mxu0 %v3141_v46  ;;  %v836_v5 = vmax.f32 %v676_v57, 0.0  ;;  %v3148_v57 = vld [vmem:[#allocation7 + $0x1a0] ss:$8 sps:$4 sm:$0xff]  }
 0x176   :  { %v867_v7 = vmax.f32 %v525_v60, 0.0  ;;  %v837_v8 = vmax.f32 %v678_v1, 0.0  ;;  %v3153_v1 = vld [vmem:[#allocation7 + $0x1b4] ss:$8 sps:$4 sm:$0xff]  }
 0x177   :  { %v974_v9 = vpack.c.bf16 %v866_v3, %v862_v2  ;;  %v3612_v10 = vpack.c.bf16 %v836_v5, %v832_v56 }
 0x178   :  { %v975_v11 = vpack.c.bf16 %v867_v7, %v863_v6  ;;  %v528_v12 = vpop.f32.mrb[20].mxu0  ;;  %1626 = vmatpush1.bf16.msra.mxu0 %v3139_v61  ;;  %v3614_v14 = vpack.c.bf16 %v837_v8, %v833_v63  ;;  %v681_v15 = vpop.f32.mrb[20].mxu1 }
 0x179   :  { %v529_v16 = vadd.f32 %v528_v12, %v3541_v24  ;;  %v530_v17 = vpop.f32.mrb[21].mxu0  ;;  %1627 = vmatprep.subr.bf16.mxu0 %v3144_v4  ;;  %v682_v25 = vadd.f32 %v681_v15, %v3595_v32  ;;  %v683_v26 = vpop.f32.mrb[21].mxu1 }
 0x17a   :  { %v531_v27 = vadd.f32 %v530_v17, %v3546_v0  ;;  %v532_v29 = vpop.f32.mrb[22].mxu0  ;;  %1490 = vmatprep.mubr.bf16.mxu0 %v975_v11  ;;  %v684_v30 = vadd.f32 %v683_v26, %v3598_v36  ;;  %v685_v31 = vpop.f32.mrb[22].mxu1 }
 0x17b   :  { %v533_v33 = vadd.f32 %v532_v29, %v3541_v24  ;;  %v534_v34 = vpop.f32.mrb[23].mxu0  ;;  %1491 = vmatmul.mubr.bf16.gmra.mrb[64].mxu0 %v974_v9  ;;  %v840_v35 = vmax.f32 %v682_v25, 0.0  ;;  %v686_v37 = vadd.f32 %v685_v31, %v3595_v32  ;;  %v687_v39 = vpop.f32.mrb[23].mxu1  ;;  %v870_v45 = vmax.f32 %v529_v16, 0.0  ;;  %v3151_v16 = vld [vmem:[#allocation7 + $0x1b0] ss:$8 sps:$4 sm:$0xff]  }
 0x17c   :  { %v535_v40 = vadd.f32 %v534_v34, %v3546_v0  ;;  %1628 = vmatpush1.bf16.msra.mxu0 %v3142_v13  ;;  %v841_v43 = vmax.f32 %v684_v30, 0.0  ;;  %v688_v44 = vadd.f32 %v687_v39, %v3598_v36  ;;  %v871_v19 = vmax.f32 %v531_v27, 0.0  ;;  %v3156_v27 = vld [vmem:[#allocation7 + $0x1c4] ss:$8 sps:$4 sm:$0xff]  }
 0x17d   :  { %v874_v46 = vmax.f32 %v533_v33, 0.0  ;;  %1629 = vmatprep.subr.bf16.mxu0 %v3147_v18  ;;  %v844_v48 = vmax.f32 %v686_v37, 0.0 }
 0x17e   :  { %v875_v49 = vmax.f32 %v535_v40, 0.0  ;;  %v845_v51 = vmax.f32 %v688_v44, 0.0  ;;  %v3154_v40 = vld [vmem:[#allocation7 + $0x1c0] ss:$8 sps:$4 sm:$0xff]  }
 0x17f   :  { %v978_v52 = vpack.c.bf16 %v874_v46, %v870_v45  ;;  %v3624_v53 = vpack.c.bf16 %v844_v48, %v840_v35  ;;  %v3159_v46 = vld [vmem:[#allocation7 + $0x1d4] ss:$8 sps:$4 sm:$0xff]  }
 0x180   :  { %v979_v55 = vpack.c.bf16 %v875_v49, %v871_v19  ;;  %v538_v56 = vpop.f32.mrb[24].mxu0  ;;  %1630 = vmatpush1.bf16.msra.mxu0 %v3145_v41  ;;  %v3626_v59 = vpack.c.bf16 %v845_v51, %v841_v43  ;;  %v691_v60 = vpop.f32.mrb[24].mxu1 }
 0x181   :  { %v539_v61 = vadd.f32 %v538_v56, %v3541_v24  ;;  %v540_v63 = vpop.f32.mrb[25].mxu0  ;;  %1631 = vmatprep.subr.bf16.mxu0 %v3150_v47  ;;  %v692_v2 = vadd.f32 %v691_v60, %v3595_v32  ;;  %v693_v3 = vpop.f32.mrb[25].mxu1 }
 0x182   :  { %v541_v4 = vadd.f32 %v540_v63, %v3546_v0  ;;  %v542_v5 = vpop.f32.mrb[26].mxu0  ;;  %1500 = vmatprep.mubr.bf16.mxu0 %v979_v55  ;;  %v694_v6 = vadd.f32 %v693_v3, %v3598_v36  ;;  %v695_v7 = vpop.f32.mrb[26].mxu1 }
 0x183   :  { %v543_v8 = vadd.f32 %v542_v5, %v3541_v24  ;;  %v544_v9 = vpop.f32.mrb[27].mxu0  ;;  %1501 = vmatmul.mubr.bf16.gmra.mrb[68].mxu0 %v978_v52  ;;  %v848_v11 = vmax.f32 %v692_v2, 0.0  ;;  %v696_v12 = vadd.f32 %v695_v7, %v3595_v32  ;;  %v697_v13 = vpop.f32.mrb[27].mxu1  ;;  %v878_v25 = vmax.f32 %v539_v61, 0.0 }
 0x184   :  { %v545_v15 = vadd.f32 %v544_v9, %v3546_v0  ;;  %1632 = vmatpush1.bf16.msra.mxu0 %v3148_v57  ;;  %v849_v17 = vmax.f32 %v694_v6, 0.0  ;;  %v698_v18 = vadd.f32 %v697_v13, %v3598_v36  ;;  %v879_v30 = vmax.f32 %v541_v4, 0.0  ;;  %v3162_v6 = vld [vmem:[#allocation7 + $0x1e4] ss:$8 sps:$4 sm:$0xff]  }
 0x185   :  { %v882_v26 = vmax.f32 %v543_v8, 0.0  ;;  %1633 = vmatprep.subr.bf16.mxu0 %v3153_v1  ;;  %v852_v29 = vmax.f32 %v696_v12, 0.0  ;;  %v3157_v1 = vld [vmem:[#allocation7 + $0x1d0] ss:$8 sps:$4 sm:$0xff]  }
 0x186   :  { %v883_v31 = vmax.f32 %v545_v15, 0.0  ;;  %v853_v33 = vmax.f32 %v698_v18, 0.0 }
 0x187   :  { %v982_v34 = vpack.c.bf16 %v882_v26, %v878_v25  ;;  %v3636_v35 = vpack.c.bf16 %v852_v29, %v848_v11  ;;  %v3165_v29 = vld [vmem:[#allocation7 + $0x1f4] ss:$8 sps:$4 sm:$0xff]  }
 0x188   :  { %v983_v37 = vpack.c.bf16 %v883_v31, %v879_v30  ;;  %v548_v39 = vpop.f32.mrb[28].mxu0  ;;  %1634 = vmatpush1.bf16.msra.mxu0 %v3151_v16  ;;  %v3638_v41 = vpack.c.bf16 %v853_v33, %v849_v17  ;;  %v701_v43 = vpop.f32.mrb[28].mxu1  ;;  %v3160_v17 = vld [vmem:[#allocation7 + $0x1e0] ss:$8 sps:$4 sm:$0xff]  }
 0x189   :  { %v549_v44 = vadd.f32 %v548_v39, %v3541_v24  ;;  %v550_v45 = vpop.f32.mrb[29].mxu0  ;;  %1635 = vmatprep.subr.bf16.mxu0 %v3156_v27  ;;  %v702_v47 = vadd.f32 %v701_v43, %v3595_v32  ;;  %v703_v48 = vpop.f32.mrb[29].mxu1 }
 0x18a   :  { %v551_v19 = vadd.f32 %v550_v45, %v3546_v0  ;;  %v552_v49 = vpop.f32.mrb[30].mxu0  ;;  %1510 = vmatprep.mubr.bf16.mxu0 %v983_v37  ;;  %v704_v51 = vadd.f32 %v703_v48, %v3598_v36  ;;  %v705_v52 = vpop.f32.mrb[30].mxu1  ;;  %v3163_v48 = vld [vmem:[#allocation7 + $0x1f0] ss:$8 sps:$4 sm:$0xff]  }
 0x18b   :  { %v553_v55 = vadd.f32 %v552_v49, %v3541_v24  ;;  %v554_v56 = vpop.f32.mrb[31].mxu0  ;;  %1511 = vmatmul.mubr.bf16.gmra.mrb[72].mxu0 %v982_v34  ;;  %v856_v57 = vmax.f32 %v702_v47, 0.0  ;;  %v706_v60 = vadd.f32 %v705_v52, %v3595_v32  ;;  %v707_v61 = vpop.f32.mrb[31].mxu1  ;;  %v886_v4 = vmax.f32 %v549_v44, 0.0 }
 0x18c   :  { %v555_v63 = vadd.f32 %v554_v56, %v3546_v0  ;;  %1636 = vmatpush1.bf16.msra.mxu0 %v3154_v40  ;;  %v857_v2 = vmax.f32 %v704_v51, 0.0  ;;  %v708_v3 = vadd.f32 %v707_v61, %v3598_v36  ;;  %v887_v8 = vmax.f32 %v551_v19, 0.0 }
 0x18d   :  { %v890_v5 = vmax.f32 %v553_v55, 0.0  ;;  %1637 = vmatprep.subr.bf16.mxu0 %v3159_v46  ;;  %v860_v7 = vmax.f32 %v706_v60, 0.0 }
 0x18e   :  { %v891_v9 = vmax.f32 %v555_v63, 0.0  ;;  %v861_v11 = vmax.f32 %v708_v3, 0.0 }
 0x18f   :  { %v986_v12 = vpack.c.bf16 %v890_v5, %v886_v4  ;;  %v3648_v13 = vpack.c.bf16 %v860_v7, %v856_v57 }
 0x190   :  { %v987_v15 = vpack.c.bf16 %v891_v9, %v887_v8  ;;  %v558_v16 = vpop.f32.mrb[32].mxu0  ;;  %1638 = vmatpush1.bf16.msra.mxu0 %v3157_v1  ;;  %v3650_v18 = vpack.c.bf16 %v861_v11, %v857_v2  ;;  %v711_v25 = vpop.f32.mrb[32].mxu1 }
 0x191   :  { %v559_v26 = vadd.f32 %v558_v16, %v3541_v24  ;;  %v560_v27 = vpop.f32.mrb[33].mxu0  ;;  %1639 = vmatprep.subr.bf16.mxu0 %v3162_v6  ;;  %v712_v30 = vadd.f32 %v711_v25, %v3595_v32  ;;  %v713_v31 = vpop.f32.mrb[33].mxu1 }
 0x192   :  { %v561_v33 = vadd.f32 %v560_v27, %v3546_v0  ;;  %v562_v34 = vpop.f32.mrb[34].mxu0  ;;  %1520 = vmatprep.mubr.bf16.mxu0 %v987_v15  ;;  %v714_v37 = vadd.f32 %v713_v31, %v3598_v36  ;;  %v715_v39 = vpop.f32.mrb[34].mxu1 }
 0x193   :  { %v563_v40 = vadd.f32 %v562_v34, %v3541_v24  ;;  %v564_v43 = vpop.f32.mrb[35].mxu0  ;;  %1521 = vmatmul.mubr.bf16.gmra.mrb[76].mxu0 %v986_v12  ;;  %v864_v44 = vmax.f32 %v712_v30, 0.0  ;;  %v716_v45 = vadd.f32 %v715_v39, %v3595_v32  ;;  %v717_v46 = vpop.f32.mrb[35].mxu1  ;;  %v894_v51 = vmax.f32 %v559_v26, 0.0 }
 0x194   :  { %v565_v47 = vadd.f32 %v564_v43, %v3546_v0  ;;  %1640 = vmatpush1.bf16.msra.mxu0 %v3160_v17  ;;  %v865_v19 = vmax.f32 %v714_v37, 0.0  ;;  %v718_v49 = vadd.f32 %v717_v46, %v3598_v36  ;;  %v895_v56 = vmax.f32 %v561_v33, 0.0 }
 0x195   :  { %v898_v52 = vmax.f32 %v563_v40, 0.0  ;;  %1641 = vmatprep.subr.bf16.mxu0 %v3165_v29  ;;  %v868_v55 = vmax.f32 %v716_v45, 0.0 }
 0x196   :  { %v899_v57 = vmax.f32 %v565_v47, 0.0  ;;  %v869_v60 = vmax.f32 %v718_v49, 0.0 }
 0x197   :  { %v990_v61 = vpack.c.bf16 %v898_v52, %v894_v51  ;;  %v3660_v63 = vpack.c.bf16 %v868_v55, %v864_v44 }
 0x198   :  { %v991_v1 = vpack.c.bf16 %v899_v57, %v895_v56  ;;  %v568_v2 = vpop.f32.mrb[36].mxu0  ;;  %1642 = vmatpush1.bf16.msra.mxu0 %v3163_v48  ;;  %v3662_v3 = vpack.c.bf16 %v869_v60, %v865_v19  ;;  %v721_v4 = vpop.f32.mrb[36].mxu1 }
 0x199   :  { %v569_v5 = vadd.f32 %v568_v2, %v3541_v24  ;;  %v570_v6 = vpop.f32.mrb[37].mxu0  ;;  %v722_v7 = vadd.f32 %v721_v4, %v3595_v32  ;;  %v723_v8 = vpop.f32.mrb[37].mxu1 }
 0x19a   :  { %v571_v9 = vadd.f32 %v570_v6, %v3546_v0  ;;  %v572_v11 = vpop.f32.mrb[38].mxu0  ;;  %1530 = vmatprep.mubr.bf16.mxu0 %v991_v1  ;;  %v724_v12 = vadd.f32 %v723_v8, %v3598_v36  ;;  %v725_v15 = vpop.f32.mrb[38].mxu1 }
 0x19b   :  { %v573_v16 = vadd.f32 %v572_v11, %v3541_v24  ;;  %v574_v17 = vpop.f32.mrb[39].mxu0  ;;  %1531 = vmatmul.mubr.bf16.gmra.mrb[80].mxu0 %v990_v61  ;;  %v872_v25 = vmax.f32 %v722_v7, 0.0  ;;  %v726_v26 = vadd.f32 %v725_v15, %v3595_v32  ;;  %v727_v27 = vpop.f32.mrb[39].mxu1  ;;  %v902_v33 = vmax.f32 %v569_v5, 0.0 }
 0x19c   :  { %v575_v29 = vadd.f32 %v574_v17, %v3546_v0  ;;  %v873_v30 = vmax.f32 %v724_v12, 0.0  ;;  %v728_v31 = vadd.f32 %v727_v27, %v3598_v36  ;;  %v903_v39 = vmax.f32 %v571_v9, 0.0 }
 0x19d   :  { %v906_v34 = vmax.f32 %v573_v16, 0.0  ;;  %v876_v37 = vmax.f32 %v726_v26, 0.0 }
 0x19e   :  { %v907_v40 = vmax.f32 %v575_v29, 0.0  ;;  %v877_v43 = vmax.f32 %v728_v31, 0.0 }
 0x19f   :  { %v994_v44 = vpack.c.bf16 %v906_v34, %v902_v33  ;;  %v3672_v45 = vpack.c.bf16 %v876_v37, %v872_v25 }
 0x1a0   :  { %v995_v46 = vpack.c.bf16 %v907_v40, %v903_v39  ;;  %v578_v47 = vpop.f32.mrb[40].mxu0  ;;  %v3674_v48 = vpack.c.bf16 %v877_v43, %v873_v30  ;;  %v731_v19 = vpop.f32.mrb[40].mxu1 }
 0x1a1   :  { %v579_v49 = vadd.f32 %v578_v47, %v3541_v24  ;;  %v580_v51 = vpop.f32.mrb[41].mxu0  ;;  %v732_v52 = vadd.f32 %v731_v19, %v3595_v32  ;;  %v733_v55 = vpop.f32.mrb[41].mxu1 }
 0x1a2   :  { %v581_v56 = vadd.f32 %v580_v51, %v3546_v0  ;;  %v582_v57 = vpop.f32.mrb[42].mxu0  ;;  %1540 = vmatprep.mubr.bf16.mxu0 %v995_v46  ;;  %v734_v60 = vadd.f32 %v733_v55, %v3598_v36  ;;  %v735_v61 = vpop.f32.mrb[42].mxu1 }
 0x1a3   :  { %v583_v1 = vadd.f32 %v582_v57, %v3541_v24  ;;  %v584_v2 = vpop.f32.mrb[43].mxu0  ;;  %1541 = vmatmul.mubr.bf16.gmra.mrb[84].mxu0 %v994_v44  ;;  %v880_v4 = vmax.f32 %v732_v52, 0.0  ;;  %v736_v5 = vadd.f32 %v735_v61, %v3595_v32  ;;  %v737_v6 = vpop.f32.mrb[43].mxu1  ;;  %v910_v11 = vmax.f32 %v579_v49, 0.0 }
 0x1a4   :  { %v585_v7 = vadd.f32 %v584_v2, %v3546_v0  ;;  %v881_v8 = vmax.f32 %v734_v60, 0.0  ;;  %v738_v9 = vadd.f32 %v737_v6, %v3598_v36  ;;  %v911_v16 = vmax.f32 %v581_v56, 0.0 }
 0x1a5   :  { %v914_v12 = vmax.f32 %v583_v1, 0.0  ;;  %v884_v15 = vmax.f32 %v736_v5, 0.0 }
 0x1a6   :  { %v915_v17 = vmax.f32 %v585_v7, 0.0  ;;  %v885_v25 = vmax.f32 %v738_v9, 0.0 }
 0x1a7   :  { %v998_v26 = vpack.c.bf16 %v914_v12, %v910_v11  ;;  %v3684_v27 = vpack.c.bf16 %v884_v15, %v880_v4 }
 0x1a8   :  { %v999_v29 = vpack.c.bf16 %v915_v17, %v911_v16  ;;  %v588_v30 = vpop.f32.mrb[44].mxu0  ;;  %v3686_v31 = vpack.c.bf16 %v885_v25, %v881_v8  ;;  %v741_v33 = vpop.f32.mrb[44].mxu1 }
 0x1a9   :  { %v589_v34 = vadd.f32 %v588_v30, %v3541_v24  ;;  %v590_v37 = vpop.f32.mrb[45].mxu0  ;;  %v742_v39 = vadd.f32 %v741_v33, %v3595_v32  ;;  %v743_v40 = vpop.f32.mrb[45].mxu1  ;;  %v3166_v33 = vld [vmem:[#allocation8 + $0x40] sm:$0xff]  }
 0x1aa   :  { %v591_v43 = vadd.f32 %v590_v37, %v3546_v0  ;;  %v592_v44 = vpop.f32.mrb[46].mxu0  ;;  %1550 = vmatprep.mubr.bf16.mxu0 %v999_v29  ;;  %v744_v46 = vadd.f32 %v743_v40, %v3598_v36  ;;  %v745_v47 = vpop.f32.mrb[46].mxu1  ;;  %2665 = vmatprep.subr.bf16.mxu1 %v3166_v33 }
 0x1ab   :  { %v593_v19 = vadd.f32 %v592_v44, %v3541_v24  ;;  %v594_v49 = vpop.f32.mrb[47].mxu0  ;;  %1551 = vmatmul.mubr.bf16.gmra.mrb[88].mxu0 %v998_v26  ;;  %v888_v51 = vmax.f32 %v742_v39, 0.0  ;;  %v746_v52 = vadd.f32 %v745_v47, %v3595_v32  ;;  %v747_v55 = vpop.f32.mrb[47].mxu1  ;;  %v918_v61 = vmax.f32 %v589_v34, 0.0  ;;  %v3167_v34 = vld [vmem:[#allocation8] sm:$0xff]  }
 0x1ac   :  { %v595_v56 = vadd.f32 %v594_v49, %v3546_v0  ;;  %v889_v57 = vmax.f32 %v744_v46, 0.0  ;;  %v748_v60 = vadd.f32 %v747_v55, %v3598_v36  ;;  %v919_v4 = vmax.f32 %v591_v43, 0.0  ;;  %2666 = vmatpush3.bf16.msra.mxu1 %v3167_v34 }
 0x1ad   :  { %v922_v1 = vmax.f32 %v593_v19, 0.0  ;;  %v892_v2 = vmax.f32 %v746_v52, 0.0 }
 0x1ae   :  { %v923_v5 = vmax.f32 %v595_v56, 0.0  ;;  %v893_v6 = vmax.f32 %v748_v60, 0.0 }
 0x1af   :  { %v1002_v7 = vpack.c.bf16 %v922_v1, %v918_v61  ;;  %v3696_v8 = vpack.c.bf16 %v892_v2, %v888_v51 }
 0x1b0   :  { %v1003_v24 = vpack.c.bf16 %v923_v5, %v919_v4  ;;  %v3698_v9 = vpack.c.bf16 %v893_v6, %v889_v57  ;;  %v751_v11 = vpop.f32.mrb[48].mxu1 }
 0x1b1   :  { %v752_v12 = vadd.f32 %v751_v11, %v3595_v32  ;;  %v753_v15 = vpop.f32.mrb[49].mxu1 }
 0x1b2   :  { %1560 = vmatprep.mubr.bf16.mxu0 %v1003_v24  ;;  %v754_v0 = vadd.f32 %v753_v15, %v3598_v36  ;;  %v755_v16 = vpop.f32.mrb[50].mxu1  ;;  %v3168_v15 = vld [vmem:[#allocation8 + $0x48] sm:$0xff]  }
 0x1b3   :  { %1561 = vmatmul.mubr.bf16.gmra.mrb[92].mxu0 %v1002_v7  ;;  %v896_v17 = vmax.f32 %v752_v12, 0.0  ;;  %v756_v25 = vadd.f32 %v755_v16, %v3595_v32  ;;  %v757_v26 = vpop.f32.mrb[51].mxu1  ;;  %2667 = vmatprep.subr.bf16.mxu1 %v3168_v15 }
 0x1b4   :  { %1570 = vmatprep.mubr.bf16.mxu0 %v3558_v54  ;;  %v897_v29 = vmax.f32 %v754_v0, 0.0  ;;  %v758_v30 = vadd.f32 %v757_v26, %v3598_v36  ;;  %v3169_v0 = vld [vmem:[#allocation8 + $0x8] sm:$0xff]  }
 0x1b5   :  { %v900_v37 = vmax.f32 %v756_v25, 0.0  ;;  %2668 = vmatpush3.bf16.msra.mxu1 %v3169_v0 }
 0x1b6   :  { %v901_v39 = vmax.f32 %v758_v30, 0.0 }
 0x1b7   :  { %v3705_v40 = vpack.c.bf16 %v900_v37, %v896_v17 }
 0x1b8   :  { %v3707_v43 = vpack.c.bf16 %v901_v39, %v897_v29  ;;  %v761_v44 = vpop.f32.mrb[52].mxu1 }
 0x1b9   :  { %v762_v46 = vadd.f32 %v761_v44, %v3595_v32  ;;  %v763_v47 = vpop.f32.mrb[53].mxu1 }
 0x1ba   :  { %v764_v19 = vadd.f32 %v763_v47, %v3598_v36  ;;  %v765_v54 = vpop.f32.mrb[54].mxu1 }
 0x1bb   :  { %1571 = vmatmul.mubr.bf16.gmra.mrb[96].mxu0 %v3556_v50  ;;  %v904_v49 = vmax.f32 %v762_v46, 0.0  ;;  %v766_v51 = vadd.f32 %v765_v54, %v3595_v32  ;;  %v767_v52 = vpop.f32.mrb[55].mxu1 }
 0x1bc   :  { %1580 = vmatprep.mubr.bf16.mxu0 %v3570_v28  ;;  %v905_v55 = vmax.f32 %v764_v19, 0.0  ;;  %v768_v56 = vadd.f32 %v767_v52, %v3598_v36 }
 0x1bd   :  { %v908_v57 = vmax.f32 %v766_v51, 0.0 }
 0x1be   :  { %v909_v60 = vmax.f32 %v768_v56, 0.0 }
 0x1bf   :  { %v3715_v61 = vpack.c.bf16 %v908_v57, %v904_v49 }
 0x1c0   :  { %v3717_v1 = vpack.c.bf16 %v909_v60, %v905_v55  ;;  %v771_v2 = vpop.f32.mrb[56].mxu1 }
 0x1c1   :  { %v772_v4 = vadd.f32 %v771_v2, %v3595_v32  ;;  %v773_v5 = vpop.f32.mrb[57].mxu1  ;;  %v3170_v2 = vld [vmem:[#allocation8 + $0x50] sm:$0xff]  }
 0x1c2   :  { %v774_v50 = vadd.f32 %v773_v5, %v3598_v36  ;;  %v775_v6 = vpop.f32.mrb[58].mxu1  ;;  %v3172_v5 = vld [vmem:[#allocation8 + $0x58] sm:$0xff]   ;;  %2669 = vmatprep.subr.bf16.mxu1 %v3170_v2 }
 0x1c3   :  { %1581 = vmatmul.mubr.bf16.gmra.mrb[100].mxu0 %v3568_v20  ;;  %v912_v7 = vmax.f32 %v772_v4, 0.0  ;;  %v776_v28 = vadd.f32 %v775_v6, %v3595_v32  ;;  %v777_v24 = vpop.f32.mrb[59].mxu1  ;;  %v3171_v4 = vld [vmem:[#allocation8 + $0x10] sm:$0xff]   ;;  %v3180_v2 = vld [vmem:[#allocation8 + $0x78] sm:$0xff]  }
 0x1c4   :  { %1590 = vmatprep.mubr.bf16.mxu0 %v3582_v62  ;;  %v913_v11 = vmax.f32 %v774_v50, 0.0  ;;  %v778_v12 = vadd.f32 %v777_v24, %v3598_v36  ;;  %2670 = vmatpush3.bf16.msra.mxu1 %v3171_v4  ;;  %v3173_v24 = vld [vmem:[#allocation8 + $0x18] sm:$0xff]  }
 0x1c5   :  { %v916_v16 = vmax.f32 %v776_v28, 0.0  ;;  %2671 = vmatprep.subr.bf16.mxu1 %v3172_v5 }
 0x1c6   :  { %v917_v17 = vmax.f32 %v778_v12, 0.0 }
 0x1c7   :  { %v3725_v25 = vpack.c.bf16 %v916_v16, %v912_v7 }
 0x1c8   :  { %v3727_v26 = vpack.c.bf16 %v917_v17, %v913_v11  ;;  %v781_v20 = vpop.f32.mrb[60].mxu1  ;;  %2672 = vmatpush3.bf16.msra.mxu1 %v3173_v24 }
 0x1c9   :  { %v782_v29 = vadd.f32 %v781_v20, %v3595_v32  ;;  %v783_v30 = vpop.f32.mrb[61].mxu1  ;;  %v3175_v20 = vld [vmem:[#allocation8 + $0x20] sm:$0xff]  }
 0x1ca   :  { %v784_v33 = vadd.f32 %v783_v30, %v3598_v36  ;;  %v785_v62 = vpop.f32.mrb[62].mxu1 }
 0x1cb   :  { %1591 = vmatmul.mubr.bf16.gmra.mrb[104].mxu0 %v3580_v58  ;;  %v920_v34 = vmax.f32 %v782_v29, 0.0  ;;  %v786_v37 = vadd.f32 %v785_v62, %v3595_v32  ;;  %v787_v39 = vpop.f32.mrb[63].mxu1  ;;  %v3176_v62 = vld [vmem:[#allocation8 + $0x68] sm:$0xff]  }
 0x1cc   :  { %1600 = vmatprep.mubr.bf16.mxu0 %v3602_v42  ;;  %v921_v44 = vmax.f32 %v784_v33, 0.0  ;;  %v788_v46 = vadd.f32 %v787_v39, %v3598_v36 }
 0x1cd   :  { %v924_v47 = vmax.f32 %v786_v37, 0.0 }
 0x1ce   :  { %v925_v19 = vmax.f32 %v788_v46, 0.0  ;;  %v3177_v46 = vld [vmem:[#allocation8 + $0x28] sm:$0xff]  }
 0x1cf   :  { %v3735_v54 = vpack.c.bf16 %v924_v47, %v920_v34 }
 0x1d0   :  { %v3737_v49 = vpack.c.bf16 %v925_v19, %v921_v44  ;;  %v791_v51 = vpop.f32.mrb[64].mxu1  ;;  %v3178_v19 = vld [vmem:[#allocation8 + $0x70] sm:$0xff]  }
 0x1d1   :  { %v792_v52 = vadd.f32 %v791_v51, %v3595_v32  ;;  %v793_v55 = vpop.f32.mrb[65].mxu1 }
 0x1d2   :  { %v794_v58 = vadd.f32 %v793_v55, %v3598_v36  ;;  %v795_v56 = vpop.f32.mrb[66].mxu1 }
 0x1d3   :  { %1601 = vmatmul.mubr.bf16.gmra.mrb[108].mxu0 %v3600_v38  ;;  %v928_v57 = vmax.f32 %v792_v52, 0.0  ;;  %v796_v42 = vadd.f32 %v795_v56, %v3595_v32  ;;  %v797_v60 = vpop.f32.mrb[67].mxu1  ;;  %v3174_v38 = vld [vmem:[#allocation8 + $0x60] sm:$0xff]  }
 0x1d4   :  { %1643 = vmatprep.mubr.bf16.mxu0 %v3614_v14  ;;  %v929_v50 = vmax.f32 %v794_v58, 0.0  ;;  %v798_v6 = vadd.f32 %v797_v60, %v3598_v36  ;;  %2673 = vmatprep.subr.bf16.mxu1 %v3174_v38 }
 0x1d5   :  { %v932_v7 = vmax.f32 %v796_v42, 0.0  ;;  %2674 = vmatpush3.bf16.msra.mxu1 %v3175_v20 }
 0x1d6   :  { %v933_v28 = vmax.f32 %v798_v6, 0.0  ;;  %2675 = vmatprep.subr.bf16.mxu1 %v3176_v62 }
 0x1d7   :  { %v3745_v11 = vpack.c.bf16 %v932_v7, %v928_v57  ;;  %v3181_v7 = vld [vmem:[#allocation8 + $0x38] sm:$0xff]  }
 0x1d8   :  { %v3747_v12 = vpack.c.bf16 %v933_v28, %v929_v50  ;;  %v801_v15 = vpop.f32.mrb[68].mxu1 }
 0x1d9   :  { %v802_v0 = vadd.f32 %v801_v15, %v3595_v32  ;;  %v803_v16 = vpop.f32.mrb[69].mxu1  ;;  %2676 = vmatpush3.bf16.msra.mxu1 %v3177_v46  ;;  %v3184_v46 = vld [vmem:[#allocation10 + $0x10] sm:$0xff]  }
 0x1da   :  { %v804_v14 = vadd.f32 %v803_v16, %v3598_v36  ;;  %v805_v17 = vpop.f32.mrb[70].mxu1  ;;  %2677 = vmatprep.subr.bf16.mxu1 %v3178_v19 }
 0x1db   :  { %1644 = vmatmul.mubr.bf16.vlgmr.msra.gmra.mrb[48].mxu0 %v3612_v10  ;;  %v936_v29 = vmax.f32 %v802_v0, 0.0  ;;  %v806_v30 = vadd.f32 %v805_v17, %v3595_v32  ;;  %v807_v33 = vpop.f32.mrb[71].mxu1 }
 0x1dc   :  { %1653 = vmatprep.mubr.bf16.mxu0 %v3626_v59  ;;  %v937_v34 = vmax.f32 %v804_v14, 0.0  ;;  %v808_v37 = vadd.f32 %v807_v33, %v3598_v36  ;;  %v3179_v59 = vld [vmem:[#allocation8 + $0x30] sm:$0xff]  }
 0x1dd   :  { %v940_v39 = vmax.f32 %v806_v30, 0.0  ;;  %2678 = vmatpush3.bf16.msra.mxu1 %v3179_v59 }
 0x1de   :  { %v941_v44 = vmax.f32 %v808_v37, 0.0  ;;  %2679 = vmatprep.subr.bf16.mxu1 %v3180_v2 }
 0x1df   :  { %v3755_v47 = vpack.c.bf16 %v940_v39, %v936_v29 }
 0x1e0   :  { %v1013_v10 = vpack.c.bf16 %v941_v44, %v937_v34  ;;  %v811_v51 = vpop.f32.mrb[72].mxu1 }
 0x1e1   :  { %v812_v52 = vadd.f32 %v811_v51, %v3595_v32  ;;  %v813_v55 = vpop.f32.mrb[73].mxu1  ;;  %2680 = vmatpush3.bf16.msra.mxu1 %v3181_v7 }
 0x1e2   :  { %v814_v58 = vadd.f32 %v813_v55, %v3598_v36  ;;  %v815_v56 = vpop.f32.mrb[74].mxu1 }
 0x1e3   :  { %1654 = vmatmul.mubr.bf16.gmra.mrb[52].mxu0 %v3624_v53  ;;  %v944_v57 = vmax.f32 %v812_v52, 0.0  ;;  %v816_v42 = vadd.f32 %v815_v56, %v3595_v32  ;;  %v817_v60 = vpop.f32.mrb[75].mxu1  ;;  %v3185_v56 = vld [vmem:[#allocation10 + $0x18] sm:$0xff]  }
 0x1e4   :  { %1663 = vmatprep.mubr.bf16.mxu0 %v3638_v41  ;;  %v945_v4 = vmax.f32 %v814_v58, 0.0  ;;  %v818_v5 = vadd.f32 %v817_v60, %v3598_v36 }
 0x1e5   :  { %v948_v50 = vmax.f32 %v816_v42, 0.0 }
 0x1e6   :  { %v949_v6 = vmax.f32 %v818_v5, 0.0 }
 0x1e7   :  { %v1016_v28 = vpack.c.bf16 %v948_v50, %v944_v57 }
 0x1e8   :  { %v1017_v24 = vpack.c.bf16 %v949_v6, %v945_v4  ;;  %v821_v38 = vpop.f32.mrb[76].mxu1 }
 0x1e9   :  { %v822_v53 = vadd.f32 %v821_v38, %v3595_v32  ;;  %v823_v15 = vpop.f32.mrb[77].mxu1 }
 0x1ea   :  { %v824_v0 = vadd.f32 %v823_v15, %v3598_v36  ;;  %v825_v16 = vpop.f32.mrb[78].mxu1 }
 0x1eb   :  { %1664 = vmatmul.mubr.bf16.gmra.mrb[56].mxu0 %v3636_v35  ;;  %v952_v41 = vmax.f32 %v822_v53, 0.0  ;;  %v826_v14 = vadd.f32 %v825_v16, %v3595_v32  ;;  %v827_v17 = vpop.f32.mrb[79].mxu1  ;;  %v1086_v32 = vld [vmem:[%s3957_s4] sm:$0x3] }
 0x1ec   :  { %1673 = vmatprep.mubr.bf16.mxu0 %v3650_v18  ;;  %v953_v20 = vmax.f32 %v824_v0, 0.0  ;;  %v828_v29 = vadd.f32 %v827_v17, %v3598_v36  ;;  %v3794_v36 = vrot.slane %v1086_v32, %v170_v22  ;;  %v3798_v35 = vrot.slane %v1086_v32, %v174_v23 }
 0x1ed   :  { %v956_v30 = vmax.f32 %v826_v14, 0.0 }
 0x1ee   :  { %v957_v33 = vmax.f32 %v828_v29, 0.0 }
 0x1ef   :  { %v1020_v62 = vpack.c.bf16 %v956_v30, %v952_v41 }
 0x1f0   :  { %v1021_v34 = vpack.c.bf16 %v957_v33, %v953_v20 }
 0x1f3   :  { %1674 = vmatmul.mubr.bf16.gmra.mrb[60].mxu0 %v3648_v13 }
 0x1f4   :  { %1683 = vmatprep.mubr.bf16.mxu0 %v3662_v3 }
 0x1fb   :  { %1684 = vmatmul.mubr.bf16.gmra.mrb[64].mxu0 %v3660_v63 }
 0x1fc   :  { %1693 = vmatprep.mubr.bf16.mxu0 %v3674_v48 }
 0x203   :  { %1694 = vmatmul.mubr.bf16.gmra.mrb[68].mxu0 %v3672_v45 }
 0x204   :  { %1703 = vmatprep.mubr.bf16.mxu0 %v3686_v31  ;;  %v3182_v31 = vld [vmem:[#allocation10] sm:$0xff]  }
 0x205   :  { %2801 = vmatprep.subr.bf16.mxu1 %v3182_v31 }
 0x20b   :  { %1704 = vmatmul.mubr.bf16.gmra.mrb[72].mxu0 %v3684_v27 }
 0x20c   :  { %1713 = vmatprep.mubr.bf16.mxu0 %v3698_v9 }
 0x213   :  { %1714 = vmatmul.mubr.bf16.gmra.mrb[76].mxu0 %v3696_v8 }
 0x214   :  { %1723 = vmatprep.mubr.bf16.mxu0 %v3707_v43 }
 0x21b   :  { %1724 = vmatmul.mubr.bf16.gmra.mrb[80].mxu0 %v3705_v40 }
 0x21c   :  { %1733 = vmatprep.mubr.bf16.mxu0 %v3717_v1 }
 0x223   :  { %1734 = vmatmul.mubr.bf16.gmra.mrb[84].mxu0 %v3715_v61 }
 0x224   :  { %1743 = vmatprep.mubr.bf16.mxu0 %v3727_v26  ;;  %v3183_v26 = vld [vmem:[#allocation10 + $0x8] sm:$0xff]  }
 0x22b   :  { %1744 = vmatmul.mubr.bf16.gmra.mrb[88].mxu0 %v3725_v25 }
 0x22c   :  { %1753 = vmatprep.mubr.bf16.mxu0 %v3737_v49 }
 0x233   :  { %1754 = vmatmul.mubr.bf16.gmra.mrb[92].mxu0 %v3735_v54 }
 0x234   :  { %1763 = vmatprep.mubr.bf16.mxu0 %v3747_v12 }
 0x23b   :  { %1764 = vmatmul.mubr.bf16.gmra.mrb[96].mxu0 %v3745_v11 }
 0x23c   :  { %1773 = vmatprep.mubr.bf16.mxu0 %v1013_v10 }
 0x243   :  { %1774 = vmatmul.mubr.bf16.gmra.mrb[100].mxu0 %v3755_v47 }
 0x244   :  { %1783 = vmatprep.mubr.bf16.mxu0 %v1017_v24 }
 0x24b   :  { %1784 = vmatmul.mubr.bf16.gmra.mrb[104].mxu0 %v1016_v28 }
 0x24c   :  { %1793 = vmatprep.mubr.bf16.mxu0 %v1021_v34 }
 0x253   :  { %1794 = vmatmul.mubr.bf16.gmra.mrb[108].mxu0 %v1020_v62 }
 0x2ae   :  { %v1645_v13 = vpop.f32.mrb[48].mxu0 }
 0x2af   :  { %v2865_v18 = vadd.f32 %v1645_v13, %v3794_v36  ;;  %v1647_v63 = vpop.f32.mrb[49].mxu0 }
 0x2b0   :  { %v2866_v3 = vadd.f32 %v1647_v63, %v3798_v35  ;;  %v1649_v45 = vpop.f32.mrb[50].mxu0 }
 0x2b1   :  { %v2867_v48 = vadd.f32 %v1649_v45, %v3794_v36  ;;  %v1651_v27 = vpop.f32.mrb[51].mxu0  ;;  %v1804_v9 = vmax.f32 %v2865_v18, 0.0 }
 0x2b2   :  { %v2868_v8 = vadd.f32 %v1651_v27, %v3798_v35  ;;  %v1805_v40 = vmax.f32 %v2866_v3, 0.0 }
 0x2b3   :  { %v1806_v22 = vmax.f32 %v2867_v48, 0.0 }
 0x2b4   :  { %v1807_v21 = vmax.f32 %v2868_v8, 0.0 }
 0x2b5   :  { %v1868_v23 = vpack.c.bf16 %v1806_v22, %v1804_v9 }
 0x2b6   :  { %v1869_v43 = vpack.c.bf16 %v1807_v21, %v1805_v40  ;;  %v1655_v61 = vpop.f32.mrb[52].mxu0 }
 0x2b7   :  { %v2869_v1 = vadd.f32 %v1655_v61, %v3794_v36  ;;  %v1657_v25 = vpop.f32.mrb[53].mxu0 }
 0x2b8   :  { %v2870_v54 = vadd.f32 %v1657_v25, %v3798_v35  ;;  %v1659_v49 = vpop.f32.mrb[54].mxu0  ;;  %2067 = vmatprep.mubr.bf16.mxu1 %v1869_v43 }
 0x2b9   :  { %v2871_v11 = vadd.f32 %v1659_v49, %v3794_v36  ;;  %v1661_v12 = vpop.f32.mrb[55].mxu0  ;;  %2068 = vmatmul.mubr.bf16.vlgmr.msra.gmra.mrb[80].mxu1 %v1868_v23  ;;  %v1808_v39 = vmax.f32 %v2869_v1, 0.0 }
 0x2ba   :  { %v2872_v37 = vadd.f32 %v1661_v12, %v3798_v35  ;;  %2802 = vmatpush3.bf16.msra.mxu1 %v3182_v31  ;;  %v1809_v47 = vmax.f32 %v2870_v54, 0.0 }
 0x2bb   :  { %v1810_v44 = vmax.f32 %v2871_v11, 0.0  ;;  %2803 = vmatprep.subr.bf16.mxu1 %v3183_v26 }
 0x2bc   :  { %v1811_v19 = vmax.f32 %v2872_v37, 0.0 }
 0x2bd   :  { %v1870_v10 = vpack.c.bf16 %v1810_v44, %v1808_v39 }
 0x2be   :  { %v1871_v51 = vpack.c.bf16 %v1811_v19, %v1809_v47  ;;  %v1665_v52 = vpop.f32.mrb[56].mxu0  ;;  %2804 = vmatpush3.bf16.msra.mxu1 %v3183_v26 }
 0x2bf   :  { %v2873_v55 = vadd.f32 %v1665_v52, %v3794_v36  ;;  %v1667_v58 = vpop.f32.mrb[57].mxu0  ;;  %2805 = vmatprep.subr.bf16.mxu1 %v3184_v46 }
 0x2c0   :  { %v2874_v59 = vadd.f32 %v1667_v58, %v3798_v35  ;;  %v1669_v57 = vpop.f32.mrb[58].mxu0  ;;  %2075 = vmatprep.mubr.bf16.mxu1 %v1871_v51 }
 0x2c1   :  { %v2875_v42 = vadd.f32 %v1669_v57, %v3794_v36  ;;  %v1671_v60 = vpop.f32.mrb[59].mxu0  ;;  %2076 = vmatmul.mubr.bf16.gmra.mrb[84].mxu1 %v1870_v10  ;;  %v1812_v4 = vmax.f32 %v2873_v55, 0.0 }
 0x2c2   :  { %v2876_v2 = vadd.f32 %v1671_v60, %v3798_v35  ;;  %2806 = vmatpush3.bf16.msra.mxu1 %v3184_v46  ;;  %v1813_v50 = vmax.f32 %v2874_v59, 0.0 }
 0x2c3   :  { %v1814_v5 = vmax.f32 %v2875_v42, 0.0  ;;  %2807 = vmatprep.subr.bf16.mxu1 %v3185_v56 }
 0x2c4   :  { %v1815_v6 = vmax.f32 %v2876_v2, 0.0 }
 0x2c5   :  { %v1872_v7 = vpack.c.bf16 %v1814_v5, %v1812_v4 }
 0x2c6   :  { %v1873_v28 = vpack.c.bf16 %v1815_v6, %v1813_v50  ;;  %v1675_v24 = vpop.f32.mrb[60].mxu0  ;;  %2808 = vmatpush3.bf16.msra.mxu1 %v3185_v56 }
 0x2c7   :  { %v2877_v38 = vadd.f32 %v1675_v24, %v3794_v36  ;;  %v1677_v53 = vpop.f32.mrb[61].mxu0 }
 0x2c8   :  { %v2878_v15 = vadd.f32 %v1677_v53, %v3798_v35  ;;  %v1679_v0 = vpop.f32.mrb[62].mxu0  ;;  %2083 = vmatprep.mubr.bf16.mxu1 %v1873_v28 }
 0x2c9   :  { %v2879_v16 = vadd.f32 %v1679_v0, %v3794_v36  ;;  %v1681_v41 = vpop.f32.mrb[63].mxu0  ;;  %2084 = vmatmul.mubr.bf16.gmra.mrb[88].mxu1 %v1872_v7  ;;  %v1816_v17 = vmax.f32 %v2877_v38, 0.0 }
 0x2ca   :  { %v2880_v14 = vadd.f32 %v1681_v41, %v3798_v35  ;;  %v1817_v29 = vmax.f32 %v2878_v15, 0.0 }
 0x2cb   :  { %v1818_v20 = vmax.f32 %v2879_v16, 0.0 }
 0x2cc   :  { %v1819_v30 = vmax.f32 %v2880_v14, 0.0 }
 0x2cd   :  { %v1874_v33 = vpack.c.bf16 %v1818_v20, %v1816_v17 }
 0x2ce   :  { %v1875_v62 = vpack.c.bf16 %v1819_v30, %v1817_v29  ;;  %v1685_v34 = vpop.f32.mrb[64].mxu0 }
 0x2cf   :  { %v2881_v32 = vadd.f32 %v1685_v34, %v3794_v36  ;;  %v1687_v13 = vpop.f32.mrb[65].mxu0 }
 0x2d0   :  { %v2882_v18 = vadd.f32 %v1687_v13, %v3798_v35  ;;  %v1689_v63 = vpop.f32.mrb[66].mxu0  ;;  %2091 = vmatprep.mubr.bf16.mxu1 %v1875_v62 }
 0x2d1   :  { %v2883_v3 = vadd.f32 %v1689_v63, %v3794_v36  ;;  %v1691_v45 = vpop.f32.mrb[67].mxu0  ;;  %2092 = vmatmul.mubr.bf16.gmra.mrb[92].mxu1 %v1874_v33  ;;  %v1820_v27 = vmax.f32 %v2881_v32, 0.0 }
 0x2d2   :  { %v2884_v48 = vadd.f32 %v1691_v45, %v3798_v35  ;;  %v1821_v8 = vmax.f32 %v2882_v18, 0.0 }
 0x2d3   :  { %v1822_v31 = vmax.f32 %v2883_v3, 0.0 }
 0x2d4   :  { %v1823_v9 = vmax.f32 %v2884_v48, 0.0 }
 0x2d5   :  { %v1876_v22 = vpack.c.bf16 %v1822_v31, %v1820_v27 }
 0x2d6   :  { %v1877_v40 = vpack.c.bf16 %v1823_v9, %v1821_v8  ;;  %v1695_v21 = vpop.f32.mrb[68].mxu0 }
 0x2d7   :  { %v2885_v23 = vadd.f32 %v1695_v21, %v3794_v36  ;;  %v1697_v43 = vpop.f32.mrb[69].mxu0 }
 0x2d8   :  { %v2886_v61 = vadd.f32 %v1697_v43, %v3798_v35  ;;  %v1699_v1 = vpop.f32.mrb[70].mxu0  ;;  %2099 = vmatprep.mubr.bf16.mxu1 %v1877_v40 }
 0x2d9   :  { %v2887_v25 = vadd.f32 %v1699_v1, %v3794_v36  ;;  %v1701_v26 = vpop.f32.mrb[71].mxu0  ;;  %2100 = vmatmul.mubr.bf16.gmra.mrb[96].mxu1 %v1876_v22  ;;  %v1824_v49 = vmax.f32 %v2885_v23, 0.0 }
 0x2da   :  { %v2888_v54 = vadd.f32 %v1701_v26, %v3798_v35  ;;  %v1825_v12 = vmax.f32 %v2886_v61, 0.0 }
 0x2db   :  { %v1826_v11 = vmax.f32 %v2887_v25, 0.0 }
 0x2dc   :  { %v1827_v37 = vmax.f32 %v2888_v54, 0.0 }
 0x2dd   :  { %v1878_v39 = vpack.c.bf16 %v1826_v11, %v1824_v49 }
 0x2de   :  { %v1879_v44 = vpack.c.bf16 %v1827_v37, %v1825_v12  ;;  %v1705_v46 = vpop.f32.mrb[72].mxu0 }
 0x2df   :  { %v2889_v47 = vadd.f32 %v1705_v46, %v3794_v36  ;;  %v1707_v19 = vpop.f32.mrb[73].mxu0 }
 0x2e0   :  { %v2890_v10 = vadd.f32 %v1707_v19, %v3798_v35  ;;  %v1709_v51 = vpop.f32.mrb[74].mxu0  ;;  %2107 = vmatprep.mubr.bf16.mxu1 %v1879_v44 }
 0x2e1   :  { %v2891_v52 = vadd.f32 %v1709_v51, %v3794_v36  ;;  %v1711_v55 = vpop.f32.mrb[75].mxu0  ;;  %2108 = vmatmul.mubr.bf16.gmra.mrb[100].mxu1 %v1878_v39  ;;  %v1828_v56 = vmax.f32 %v2889_v47, 0.0 }
 0x2e2   :  { %v2892_v58 = vadd.f32 %v1711_v55, %v3798_v35  ;;  %v1829_v57 = vmax.f32 %v2890_v10, 0.0 }
 0x2e3   :  { %v1830_v59 = vmax.f32 %v2891_v52, 0.0 }
 0x2e4   :  { %v1831_v42 = vmax.f32 %v2892_v58, 0.0 }
 0x2e5   :  { %v1880_v60 = vpack.c.bf16 %v1830_v59, %v1828_v56 }
 0x2e6   :  { %v1881_v2 = vpack.c.bf16 %v1831_v42, %v1829_v57  ;;  %v1715_v4 = vpop.f32.mrb[76].mxu0 }
 0x2e7   :  { %v2893_v5 = vadd.f32 %v1715_v4, %v3794_v36  ;;  %v1717_v50 = vpop.f32.mrb[77].mxu0 }
 0x2e8   :  { %v2894_v6 = vadd.f32 %v1717_v50, %v3798_v35  ;;  %v1719_v7 = vpop.f32.mrb[78].mxu0  ;;  %2115 = vmatprep.mubr.bf16.mxu1 %v1881_v2 }
 0x2e9   :  { %v2895_v28 = vadd.f32 %v1719_v7, %v3794_v36  ;;  %v1721_v24 = vpop.f32.mrb[79].mxu0  ;;  %2116 = vmatmul.mubr.bf16.gmra.mrb[104].mxu1 %v1880_v60  ;;  %v1832_v53 = vmax.f32 %v2893_v5, 0.0 }
 0x2ea   :  { %v2896_v38 = vadd.f32 %v1721_v24, %v3798_v35  ;;  %v1833_v0 = vmax.f32 %v2894_v6, 0.0 }
 0x2eb   :  { %v1834_v15 = vmax.f32 %v2895_v28, 0.0 }
 0x2ec   :  { %v1835_v16 = vmax.f32 %v2896_v38, 0.0 }
 0x2ed   :  { %v1882_v41 = vpack.c.bf16 %v1834_v15, %v1832_v53  ;;  %v3186_v15 = vld [vmem:[#allocation10 + $0x20] sm:$0xff]  }
 0x2ee   :  { %v1883_v14 = vpack.c.bf16 %v1835_v16, %v1833_v0  ;;  %v1725_v17 = vpop.f32.mrb[80].mxu0  ;;  %2809 = vmatprep.subr.bf16.mxu1 %v3186_v15 }
 0x2ef   :  { %v2897_v20 = vadd.f32 %v1725_v17, %v3794_v36  ;;  %v1727_v29 = vpop.f32.mrb[81].mxu0  ;;  %2810 = vmatpush3.bf16.msra.mxu1 %v3186_v15 }
 0x2f0   :  { %v2898_v30 = vadd.f32 %v1727_v29, %v3798_v35  ;;  %v1729_v33 = vpop.f32.mrb[82].mxu0  ;;  %2123 = vmatprep.mubr.bf16.mxu1 %v1883_v14 }
 0x2f1   :  { %v2899_v62 = vadd.f32 %v1729_v33, %v3794_v36  ;;  %v1731_v34 = vpop.f32.mrb[83].mxu0  ;;  %2124 = vmatmul.mubr.bf16.gmra.mrb[108].mxu1 %v1882_v41  ;;  %v1836_v13 = vmax.f32 %v2897_v20, 0.0 }
 0x2f2   :  { %v2900_v32 = vadd.f32 %v1731_v34, %v3798_v35  ;;  %v1837_v63 = vmax.f32 %v2898_v30, 0.0  ;;  %v3187_v30 = vld [vmem:[#allocation10 + $0x28] sm:$0xff]  }
 0x2f3   :  { %v1838_v18 = vmax.f32 %v2899_v62, 0.0  ;;  %2811 = vmatprep.subr.bf16.mxu1 %v3187_v30 }
 0x2f4   :  { %v1839_v3 = vmax.f32 %v2900_v32, 0.0  ;;  %2812 = vmatpush3.bf16.msra.mxu1 %v3187_v30 }
 0x2f5   :  { %v1884_v45 = vpack.c.bf16 %v1838_v18, %v1836_v13 }
 0x2f6   :  { %v1885_v48 = vpack.c.bf16 %v1839_v3, %v1837_v63  ;;  %v1735_v27 = vpop.f32.mrb[84].mxu0  ;;  %v3188_v3 = vld [vmem:[#allocation10 + $0x30] sm:$0xff]  }
 0x2f7   :  { %v2901_v31 = vadd.f32 %v1735_v27, %v3794_v36  ;;  %v1737_v8 = vpop.f32.mrb[85].mxu0  ;;  %2813 = vmatprep.subr.bf16.mxu1 %v3188_v3 }
 0x2f8   :  { %v2902_v9 = vadd.f32 %v1737_v8, %v3798_v35  ;;  %v1739_v22 = vpop.f32.mrb[86].mxu0  ;;  %2131 = vmatprep.mubr.bf16.mxu1 %v1885_v48  ;;  %2814 = vmatpush3.bf16.msra.mxu1 %v3188_v3 }
 0x2f9   :  { %v2903_v40 = vadd.f32 %v1739_v22, %v3794_v36  ;;  %v1741_v21 = vpop.f32.mrb[87].mxu0  ;;  %2132 = vmatmul.mubr.bf16.gmra.mrb[112].mxu1 %v1884_v45  ;;  %v1840_v43 = vmax.f32 %v2901_v31, 0.0 }
 0x2fa   :  { %v2904_v23 = vadd.f32 %v1741_v21, %v3798_v35  ;;  %v1841_v1 = vmax.f32 %v2902_v9, 0.0 }
 0x2fb   :  { %v1842_v61 = vmax.f32 %v2903_v40, 0.0  ;;  %v3189_v40 = vld [vmem:[#allocation10 + $0x38] sm:$0xff]  }
 0x2fc   :  { %v1843_v25 = vmax.f32 %v2904_v23, 0.0  ;;  %2815 = vmatprep.subr.bf16.mxu1 %v3189_v40 }
 0x2fd   :  { %v1886_v26 = vpack.c.bf16 %v1842_v61, %v1840_v43  ;;  %2816 = vmatpush3.bf16.msra.mxu1 %v3189_v40 }
 0x2fe   :  { %v1887_v54 = vpack.c.bf16 %v1843_v25, %v1841_v1  ;;  %v1745_v49 = vpop.f32.mrb[88].mxu0 }
 0x2ff   :  { %v2905_v11 = vadd.f32 %v1745_v49, %v3794_v36  ;;  %v1747_v12 = vpop.f32.mrb[89].mxu0 }
 0x300   :  { %v2906_v37 = vadd.f32 %v1747_v12, %v3798_v35  ;;  %v1749_v39 = vpop.f32.mrb[90].mxu0  ;;  %2139 = vmatprep.mubr.bf16.mxu1 %v1887_v54 }
 0x301   :  { %v2907_v44 = vadd.f32 %v1749_v39, %v3794_v36  ;;  %v1751_v46 = vpop.f32.mrb[91].mxu0  ;;  %2140 = vmatmul.mubr.bf16.gmra.mrb[116].mxu1 %v1886_v26  ;;  %v1844_v19 = vmax.f32 %v2905_v11, 0.0 }
 0x302   :  { %v2908_v47 = vadd.f32 %v1751_v46, %v3798_v35  ;;  %v1845_v51 = vmax.f32 %v2906_v37, 0.0 }
 0x303   :  { %v1846_v10 = vmax.f32 %v2907_v44, 0.0 }
 0x304   :  { %v1847_v52 = vmax.f32 %v2908_v47, 0.0 }
 0x305   :  { %v1888_v55 = vpack.c.bf16 %v1846_v10, %v1844_v19 }
 0x306   :  { %v1889_v58 = vpack.c.bf16 %v1847_v52, %v1845_v51  ;;  %v1755_v56 = vpop.f32.mrb[92].mxu0 }
 0x307   :  { %v2909_v59 = vadd.f32 %v1755_v56, %v3794_v36  ;;  %v1757_v57 = vpop.f32.mrb[93].mxu0 }
 0x308   :  { %v2910_v42 = vadd.f32 %v1757_v57, %v3798_v35  ;;  %v1759_v60 = vpop.f32.mrb[94].mxu0  ;;  %2147 = vmatprep.mubr.bf16.mxu1 %v1889_v58 }
 0x309   :  { %v2911_v2 = vadd.f32 %v1759_v60, %v3794_v36  ;;  %v1761_v4 = vpop.f32.mrb[95].mxu0  ;;  %2148 = vmatmul.mubr.bf16.gmra.mrb[120].mxu1 %v1888_v55  ;;  %v1848_v50 = vmax.f32 %v2909_v59, 0.0 }
 0x30a   :  { %v2912_v5 = vadd.f32 %v1761_v4, %v3798_v35  ;;  %v1849_v7 = vmax.f32 %v2910_v42, 0.0 }
 0x30b   :  { %v1850_v6 = vmax.f32 %v2911_v2, 0.0 }
 0x30c   :  { %v1851_v28 = vmax.f32 %v2912_v5, 0.0 }
 0x30d   :  { %v1890_v24 = vpack.c.bf16 %v1850_v6, %v1848_v50 }
 0x30e   :  { %v1891_v38 = vpack.c.bf16 %v1851_v28, %v1849_v7  ;;  %v1765_v53 = vpop.f32.mrb[96].mxu0 }
 0x30f   :  { %v2913_v0 = vadd.f32 %v1765_v53, %v3794_v36  ;;  %v1767_v16 = vpop.f32.mrb[97].mxu0 }
 0x310   :  { %v2914_v41 = vadd.f32 %v1767_v16, %v3798_v35  ;;  %v1769_v14 = vpop.f32.mrb[98].mxu0  ;;  %2155 = vmatprep.mubr.bf16.mxu1 %v1891_v38  ;;  %v3867_v38 = vld [vmem:[%s3959_s6] ss:$0 sm:$0xff] }
 0x311   :  { %v2915_v17 = vadd.f32 %v1769_v14, %v3794_v36  ;;  %v1771_v20 = vpop.f32.mrb[99].mxu0  ;;  %2156 = vmatmul.mubr.bf16.gmra.mrb[124].mxu1 %v1890_v24  ;;  %v1852_v33 = vmax.f32 %v2913_v0, 0.0 }
 0x312   :  { %v2916_v29 = vadd.f32 %v1771_v20, %v3798_v35  ;;  %v1853_v34 = vmax.f32 %v2914_v41, 0.0 }
 0x313   :  { %v1854_v62 = vmax.f32 %v2915_v17, 0.0 }
 0x314   :  { %v1855_v32 = vmax.f32 %v2916_v29, 0.0 }
 0x315   :  { %v1892_v13 = vpack.c.bf16 %v1854_v62, %v1852_v33 }
 0x316   :  { %v1893_v18 = vpack.c.bf16 %v1855_v32, %v1853_v34  ;;  %v1775_v63 = vpop.f32.mrb[100].mxu0 }
 0x317   :  { %v2917_v45 = vadd.f32 %v1775_v63, %v3794_v36  ;;  %v1777_v48 = vpop.f32.mrb[101].mxu0 }
 0x318   :  { %v2918_v27 = vadd.f32 %v1777_v48, %v3798_v35  ;;  %v1779_v31 = vpop.f32.mrb[102].mxu0  ;;  %2163 = vmatprep.mubr.bf16.mxu1 %v1893_v18 }
 0x319   :  { %v2919_v8 = vadd.f32 %v1779_v31, %v3794_v36  ;;  %v1781_v9 = vpop.f32.mrb[103].mxu0  ;;  %2164 = vmatmul.mubr.bf16.gmra.mrb[128].mxu1 %v1892_v13  ;;  %v1856_v21 = vmax.f32 %v2917_v45, 0.0 }
 0x31a   :  { %v2920_v22 = vadd.f32 %v1781_v9, %v3798_v35  ;;  %v1857_v43 = vmax.f32 %v2918_v27, 0.0 }
 0x31b   :  { %v1858_v23 = vmax.f32 %v2919_v8, 0.0 }
 0x31c   :  { %v1859_v61 = vmax.f32 %v2920_v22, 0.0 }
 0x31d   :  { %v1894_v1 = vpack.c.bf16 %v1858_v23, %v1856_v21 }
 0x31e   :  { %v1895_v25 = vpack.c.bf16 %v1859_v61, %v1857_v43  ;;  %v1785_v26 = vpop.f32.mrb[104].mxu0 }
 0x31f   :  { %v2921_v54 = vadd.f32 %v1785_v26, %v3794_v36  ;;  %v1787_v49 = vpop.f32.mrb[105].mxu0 }
 0x320   :  { %v2922_v11 = vadd.f32 %v1787_v49, %v3798_v35  ;;  %v1789_v12 = vpop.f32.mrb[106].mxu0  ;;  %2171 = vmatprep.mubr.bf16.mxu1 %v1895_v25 }
 0x321   :  { %v2923_v37 = vadd.f32 %v1789_v12, %v3794_v36  ;;  %v1791_v39 = vpop.f32.mrb[107].mxu0  ;;  %2172 = vmatmul.mubr.bf16.gmra.mrb[132].mxu1 %v1894_v1  ;;  %v1860_v46 = vmax.f32 %v2921_v54, 0.0 }
 0x322   :  { %v2924_v44 = vadd.f32 %v1791_v39, %v3798_v35  ;;  %v1861_v19 = vmax.f32 %v2922_v11, 0.0 }
 0x323   :  { %v1862_v47 = vmax.f32 %v2923_v37, 0.0 }
 0x324   :  { %v1863_v10 = vmax.f32 %v2924_v44, 0.0 }
 0x325   :  { %v1896_v51 = vpack.c.bf16 %v1862_v47, %v1860_v46 }
 0x326   :  { %v1897_v52 = vpack.c.bf16 %v1863_v10, %v1861_v19  ;;  %v1795_v55 = vpop.f32.mrb[108].mxu0 }
 0x327   :  { %v2925_v58 = vadd.f32 %v1795_v55, %v3794_v36  ;;  %v1797_v56 = vpop.f32.mrb[109].mxu0 }
 0x328   :  { %v2926_v59 = vadd.f32 %v1797_v56, %v3798_v35  ;;  %v1799_v57 = vpop.f32.mrb[110].mxu0  ;;  %2179 = vmatprep.mubr.bf16.mxu1 %v1897_v52 }
 0x329   :  { %v2927_v42 = vadd.f32 %v1799_v57, %v3794_v36  ;;  %v1801_v60 = vpop.f32.mrb[111].mxu0  ;;  %2180 = vmatmul.mubr.bf16.gmra.mrb[136].mxu1 %v1896_v51  ;;  %v1864_v4 = vmax.f32 %v2925_v58, 0.0 }
 0x32a   :  { %v2928_v2 = vadd.f32 %v1801_v60, %v3798_v35  ;;  %v1865_v50 = vmax.f32 %v2926_v59, 0.0 }
 0x32b   :  { %v1866_v5 = vmax.f32 %v2927_v42, 0.0 }
 0x32c   :  { %v1867_v6 = vmax.f32 %v2928_v2, 0.0 }
 0x32d   :  { %v1898_v7 = vpack.c.bf16 %v1866_v5, %v1864_v4 }
 0x32e   :  { %v1899_v28 = vpack.c.bf16 %v1867_v6, %v1865_v50 }
 0x330   :  { %2187 = vmatprep.mubr.bf16.mxu1 %v1899_v28 }
 0x331   :  { %2188 = vmatmul.mubr.bf16.gmra.mrb[140].mxu1 %v1898_v7 }
 0x38c   :  { %v2681_v24 = vpop.f32.mrb[80].mxu1 }
 0x38d   :  { %v2682_v53 = vpop.f32.mrb[81].mxu1 }
 0x38e   :  { %v2683_v36 = vadd.f32 %v2682_v53, %v2681_v24  ;;  %v2684_v15 = vpop.f32.mrb[82].mxu1 }
 0x38f   :  { %v2685_v0 = vpop.f32.mrb[83].mxu1 }
 0x390   :  { %v2070_v35 = vadd.f32 %v2683_v36, %v3867_v38  ;;  %v2686_v16 = vadd.f32 %v2685_v0, %v2684_v15 }
 0x392   :  { %v2073_v41 = vadd.f32 %v2686_v16, %v3867_v38  ;;  %v2196_v14 = vmax.f32 %v2070_v35, 0.0 }
 0x394   :  { %v2197_v17 = vmax.f32 %v2073_v41, 0.0  ;;  %v2687_v20 = vpop.f32.mrb[84].mxu1 }
 0x395   :  { %v2688_v29 = vpop.f32.mrb[85].mxu1 }
 0x396   :  { %v2689_v30 = vadd.f32 %v2688_v29, %v2687_v20  ;;  %v2690_v33 = vpop.f32.mrb[86].mxu1  ;;  %v2228_v62 = vpack.c.bf16 %v2197_v17, %v2196_v14 }
 0x397   :  { %v2691_v34 = vpop.f32.mrb[87].mxu1 }
 0x398   :  { %v2078_v32 = vadd.f32 %v2689_v30, %v3867_v38  ;;  %v2692_v13 = vadd.f32 %v2691_v34, %v2690_v33  ;;  %2817 = vmatprep.mubr.bf16.mxu1 %v2228_v62 }
 0x39a   :  { %v2081_v18 = vadd.f32 %v2692_v13, %v3867_v38  ;;  %v2198_v63 = vmax.f32 %v2078_v32, 0.0 }
 0x39c   :  { %v2199_v3 = vmax.f32 %v2081_v18, 0.0  ;;  %v2693_v45 = vpop.f32.mrb[88].mxu1 }
 0x39d   :  { %v2694_v48 = vpop.f32.mrb[89].mxu1 }
 0x39e   :  { %v2229_v27 = vpack.c.bf16 %v2199_v3, %v2198_v63  ;;  %v2695_v31 = vadd.f32 %v2694_v48, %v2693_v45  ;;  %v2696_v8 = vpop.f32.mrb[90].mxu1 }
 0x39f   :  { %v2697_v9 = vpop.f32.mrb[91].mxu1 }
 0x3a0   :  { %v2086_v22 = vadd.f32 %v2695_v31, %v3867_v38  ;;  %v2698_v40 = vadd.f32 %v2697_v9, %v2696_v8  ;;  %2818 = vmatmul.mubr.bf16.vlgmr.msra.gmra.mrb[144].mxu1 %v2229_v27 }
 0x3a2   :  { %v2089_v21 = vadd.f32 %v2698_v40, %v3867_v38  ;;  %v2200_v23 = vmax.f32 %v2086_v22, 0.0 }
 0x3a4   :  { %v2201_v43 = vmax.f32 %v2089_v21, 0.0  ;;  %v2699_v61 = vpop.f32.mrb[92].mxu1 }
 0x3a5   :  { %v2700_v1 = vpop.f32.mrb[93].mxu1 }
 0x3a6   :  { %v2701_v25 = vadd.f32 %v2700_v1, %v2699_v61  ;;  %v2702_v26 = vpop.f32.mrb[94].mxu1  ;;  %v2230_v54 = vpack.c.bf16 %v2201_v43, %v2200_v23 }
 0x3a7   :  { %v2703_v49 = vpop.f32.mrb[95].mxu1 }
 0x3a8   :  { %v2094_v11 = vadd.f32 %v2701_v25, %v3867_v38  ;;  %v2704_v12 = vadd.f32 %v2703_v49, %v2702_v26  ;;  %2821 = vmatprep.mubr.bf16.mxu1 %v2230_v54 }
 0x3aa   :  { %v2097_v37 = vadd.f32 %v2704_v12, %v3867_v38  ;;  %v2202_v39 = vmax.f32 %v2094_v11, 0.0 }
 0x3ac   :  { %v2203_v44 = vmax.f32 %v2097_v37, 0.0  ;;  %v2705_v46 = vpop.f32.mrb[96].mxu1 }
 0x3ad   :  { %v2706_v47 = vpop.f32.mrb[97].mxu1 }
 0x3ae   :  { %v2707_v19 = vadd.f32 %v2706_v47, %v2705_v46  ;;  %v2708_v10 = vpop.f32.mrb[98].mxu1  ;;  %v2231_v51 = vpack.c.bf16 %v2203_v44, %v2202_v39 }
 0x3af   :  { %v2709_v52 = vpop.f32.mrb[99].mxu1 }
 0x3b0   :  { %v2102_v55 = vadd.f32 %v2707_v19, %v3867_v38  ;;  %v2710_v58 = vadd.f32 %v2709_v52, %v2708_v10  ;;  %2822 = vmatmul.mubr.bf16.gmra.mrb[148].mxu1 %v2231_v51 }
 0x3b2   :  { %v2105_v56 = vadd.f32 %v2710_v58, %v3867_v38  ;;  %v2204_v59 = vmax.f32 %v2102_v55, 0.0 }
 0x3b4   :  { %v2205_v57 = vmax.f32 %v2105_v56, 0.0  ;;  %v2711_v42 = vpop.f32.mrb[100].mxu1 }
 0x3b5   :  { %v2712_v60 = vpop.f32.mrb[101].mxu1 }
 0x3b6   :  { %v2713_v2 = vadd.f32 %v2712_v60, %v2711_v42  ;;  %v2714_v4 = vpop.f32.mrb[102].mxu1  ;;  %v2232_v5 = vpack.c.bf16 %v2205_v57, %v2204_v59 }
 0x3b7   :  { %v2715_v50 = vpop.f32.mrb[103].mxu1 }
 0x3b8   :  { %v2110_v6 = vadd.f32 %v2713_v2, %v3867_v38  ;;  %v2716_v7 = vadd.f32 %v2715_v50, %v2714_v4  ;;  %2825 = vmatprep.mubr.bf16.mxu1 %v2232_v5 }
 0x3ba   :  { %v2113_v28 = vadd.f32 %v2716_v7, %v3867_v38  ;;  %v2206_v24 = vmax.f32 %v2110_v6, 0.0 }
 0x3bc   :  { %v2207_v53 = vmax.f32 %v2113_v28, 0.0  ;;  %v2717_v36 = vpop.f32.mrb[104].mxu1 }
 0x3bd   :  { %v2718_v15 = vpop.f32.mrb[105].mxu1 }
 0x3be   :  { %v2719_v0 = vadd.f32 %v2718_v15, %v2717_v36  ;;  %v2720_v35 = vpop.f32.mrb[106].mxu1  ;;  %v2233_v16 = vpack.c.bf16 %v2207_v53, %v2206_v24 }
 0x3bf   :  { %v2721_v41 = vpop.f32.mrb[107].mxu1 }
 0x3c0   :  { %v2118_v14 = vadd.f32 %v2719_v0, %v3867_v38  ;;  %v2722_v17 = vadd.f32 %v2721_v41, %v2720_v35  ;;  %2826 = vmatmul.mubr.bf16.gmra.mrb[152].mxu1 %v2233_v16 }
 0x3c2   :  { %v2121_v20 = vadd.f32 %v2722_v17, %v3867_v38  ;;  %v2208_v29 = vmax.f32 %v2118_v14, 0.0 }
 0x3c4   :  { %v2209_v30 = vmax.f32 %v2121_v20, 0.0  ;;  %v2723_v33 = vpop.f32.mrb[108].mxu1 }
 0x3c5   :  { %v2724_v62 = vpop.f32.mrb[109].mxu1 }
 0x3c6   :  { %v2725_v34 = vadd.f32 %v2724_v62, %v2723_v33  ;;  %v2726_v32 = vpop.f32.mrb[110].mxu1  ;;  %v2234_v13 = vpack.c.bf16 %v2209_v30, %v2208_v29 }
 0x3c7   :  { %v2727_v18 = vpop.f32.mrb[111].mxu1 }
 0x3c8   :  { %v2126_v63 = vadd.f32 %v2725_v34, %v3867_v38  ;;  %v2728_v3 = vadd.f32 %v2727_v18, %v2726_v32  ;;  %2829 = vmatprep.mubr.bf16.mxu1 %v2234_v13 }
 0x3ca   :  { %v2129_v45 = vadd.f32 %v2728_v3, %v3867_v38  ;;  %v2210_v48 = vmax.f32 %v2126_v63, 0.0 }
 0x3cc   :  { %v2211_v27 = vmax.f32 %v2129_v45, 0.0  ;;  %v2729_v31 = vpop.f32.mrb[112].mxu1 }
 0x3cd   :  { %v2730_v8 = vpop.f32.mrb[113].mxu1 }
 0x3ce   :  { %v2731_v9 = vadd.f32 %v2730_v8, %v2729_v31  ;;  %v2732_v22 = vpop.f32.mrb[114].mxu1  ;;  %v2235_v40 = vpack.c.bf16 %v2211_v27, %v2210_v48 }
 0x3cf   :  { %v2733_v21 = vpop.f32.mrb[115].mxu1 }
 0x3d0   :  { %v2134_v23 = vadd.f32 %v2731_v9, %v3867_v38  ;;  %v2734_v43 = vadd.f32 %v2733_v21, %v2732_v22  ;;  %2830 = vmatmul.mubr.bf16.gmra.mrb[156].mxu1 %v2235_v40 }
 0x3d2   :  { %v2137_v61 = vadd.f32 %v2734_v43, %v3867_v38  ;;  %v2212_v1 = vmax.f32 %v2134_v23, 0.0 }
 0x3d4   :  { %v2213_v25 = vmax.f32 %v2137_v61, 0.0  ;;  %v2735_v26 = vpop.f32.mrb[116].mxu1 }
 0x3d5   :  { %v2736_v54 = vpop.f32.mrb[117].mxu1 }
 0x3d6   :  { %v2737_v49 = vadd.f32 %v2736_v54, %v2735_v26  ;;  %v2738_v11 = vpop.f32.mrb[118].mxu1  ;;  %v2236_v12 = vpack.c.bf16 %v2213_v25, %v2212_v1 }
 0x3d7   :  { %v2739_v37 = vpop.f32.mrb[119].mxu1 }
 0x3d8   :  { %v2142_v39 = vadd.f32 %v2737_v49, %v3867_v38  ;;  %v2740_v44 = vadd.f32 %v2739_v37, %v2738_v11  ;;  %2833 = vmatprep.mubr.bf16.mxu1 %v2236_v12 }
 0x3da   :  { %v2145_v46 = vadd.f32 %v2740_v44, %v3867_v38  ;;  %v2214_v47 = vmax.f32 %v2142_v39, 0.0 }
 0x3dc   :  { %v2215_v19 = vmax.f32 %v2145_v46, 0.0  ;;  %v2741_v10 = vpop.f32.mrb[120].mxu1 }
 0x3dd   :  { %v2742_v51 = vpop.f32.mrb[121].mxu1 }
 0x3de   :  { %v2743_v52 = vadd.f32 %v2742_v51, %v2741_v10  ;;  %v2744_v55 = vpop.f32.mrb[122].mxu1  ;;  %v2237_v58 = vpack.c.bf16 %v2215_v19, %v2214_v47 }
 0x3df   :  { %v2745_v56 = vpop.f32.mrb[123].mxu1 }
 0x3e0   :  { %v2150_v59 = vadd.f32 %v2743_v52, %v3867_v38  ;;  %v2746_v57 = vadd.f32 %v2745_v56, %v2744_v55  ;;  %2834 = vmatmul.mubr.bf16.gmra.mrb[160].mxu1 %v2237_v58  ;;  %v3904_v58 = vld [vmem:[%s3961_s8] ss:$0 sm:$0xff]  ;;  %s3342_s8 = smov [#allocation11]  }
 0x3e1   :  { %s2513_s12 = sshll.u32 %s3342_s8, 4  ;;  %s2514_s12 = int_to_ptr.vmem [resolvable:$true] %s2513_s12 }
 0x3e2   :  { %v2153_v42 = vadd.f32 %v2746_v57, %v3867_v38  ;;  %v2216_v60 = vmax.f32 %v2150_v59, 0.0  ;;  %s3300_s13 = scalar_lea.vmem %s2514_s12, 4096  ;;  %p3305_p13 = scmp.lt.s32.totalorder %s2514_s12, %s2514_s12 }
 0x3e3   :  { %p3301_p12 = scmp.ne.s32.totalorder %s2514_s12, %s3300_s13  ;;  %p3306_p0 = scmp.lt.s32.totalorder %s3300_s13, %s3300_s13 }
 0x3e4   :  { %v2217_v2 = vmax.f32 %v2153_v42, 0.0  ;;  %v2747_v4 = vpop.f32.mrb[124].mxu1 }
 0x3e5   :  { %v2748_v5 = vpop.f32.mrb[125].mxu1  ;;  %p3307_p1 = por %p3306_p0, %p3305_p13 }
 0x3e6   :  { %v2749_v50 = vadd.f32 %v2748_v5, %v2747_v4  ;;  %v2750_v6 = vpop.f32.mrb[126].mxu1  ;;  %v2238_v7 = vpack.c.bf16 %v2217_v2, %v2216_v60 }
 0x3e7   :  { %v2751_v28 = vpop.f32.mrb[127].mxu1  ;;  %p3308_p2 = pnand %p3307_p1, %p3301_p12 }
 0x3e8   :  { %v2158_v24 = vadd.f32 %v2749_v50, %v3867_v38  ;;  %v2752_v53 = vadd.f32 %v2751_v28, %v2750_v6  ;;  %2837 = vmatprep.mubr.bf16.mxu1 %v2238_v7 }
 0x3ea   :  { %v2161_v36 = vadd.f32 %v2752_v53, %v3867_v38  ;;  %v2218_v15 = vmax.f32 %v2158_v24, 0.0 }
 0x3ec   :  { %v2219_v0 = vmax.f32 %v2161_v36, 0.0  ;;  %v2753_v35 = vpop.f32.mrb[128].mxu1 }
 0x3ed   :  { %v2754_v16 = vpop.f32.mrb[129].mxu1 }
 0x3ee   :  { %v2755_v41 = vadd.f32 %v2754_v16, %v2753_v35  ;;  %v2756_v14 = vpop.f32.mrb[130].mxu1  ;;  %v2239_v17 = vpack.c.bf16 %v2219_v0, %v2218_v15 }
 0x3ef   :  { %v2757_v20 = vpop.f32.mrb[131].mxu1 }
 0x3f0   :  { %v2166_v29 = vadd.f32 %v2755_v41, %v3867_v38  ;;  %v2758_v30 = vadd.f32 %v2757_v20, %v2756_v14  ;;  %2838 = vmatmul.mubr.bf16.gmra.mrb[164].mxu1 %v2239_v17 }
 0x3f2   :  { %v2169_v33 = vadd.f32 %v2758_v30, %v3867_v38  ;;  %v2220_v62 = vmax.f32 %v2166_v29, 0.0 }
 0x3f4   :  { %v2221_v34 = vmax.f32 %v2169_v33, 0.0  ;;  %v2759_v32 = vpop.f32.mrb[132].mxu1 }
 0x3f5   :  { %v2760_v13 = vpop.f32.mrb[133].mxu1 }
 0x3f6   :  { %v2761_v18 = vadd.f32 %v2760_v13, %v2759_v32  ;;  %v2762_v63 = vpop.f32.mrb[134].mxu1  ;;  %v2240_v3 = vpack.c.bf16 %v2221_v34, %v2220_v62 }
 0x3f7   :  { %v2763_v45 = vpop.f32.mrb[135].mxu1 }
 0x3f8   :  { %v2174_v48 = vadd.f32 %v2761_v18, %v3867_v38  ;;  %v2764_v27 = vadd.f32 %v2763_v45, %v2762_v63  ;;  %2841 = vmatprep.mubr.bf16.mxu1 %v2240_v3 }
 0x3fa   :  { %v2177_v31 = vadd.f32 %v2764_v27, %v3867_v38  ;;  %v2222_v8 = vmax.f32 %v2174_v48, 0.0 }
 0x3fc   :  { %v2223_v9 = vmax.f32 %v2177_v31, 0.0  ;;  %v2765_v22 = vpop.f32.mrb[136].mxu1 }
 0x3fd   :  { %v2766_v40 = vpop.f32.mrb[137].mxu1 }
 0x3fe   :  { %v2767_v21 = vadd.f32 %v2766_v40, %v2765_v22  ;;  %v2768_v23 = vpop.f32.mrb[138].mxu1  ;;  %v2241_v43 = vpack.c.bf16 %v2223_v9, %v2222_v8 }
 0x3ff   :  { %v2769_v61 = vpop.f32.mrb[139].mxu1 }
 0x400   :  { %v2182_v1 = vadd.f32 %v2767_v21, %v3867_v38  ;;  %v2770_v25 = vadd.f32 %v2769_v61, %v2768_v23  ;;  %2842 = vmatmul.mubr.bf16.gmra.mrb[168].mxu1 %v2241_v43 }
 0x402   :  { %v2185_v26 = vadd.f32 %v2770_v25, %v3867_v38  ;;  %v2224_v54 = vmax.f32 %v2182_v1, 0.0 }
 0x404   :  { %v2225_v49 = vmax.f32 %v2185_v26, 0.0  ;;  %v2771_v11 = vpop.f32.mrb[140].mxu1 }
 0x405   :  { %v2772_v12 = vpop.f32.mrb[141].mxu1 }
 0x406   :  { %v2773_v37 = vadd.f32 %v2772_v12, %v2771_v11  ;;  %v2774_v39 = vpop.f32.mrb[142].mxu1  ;;  %v2242_v44 = vpack.c.bf16 %v2225_v49, %v2224_v54 }
 0x407   :  { %v2775_v46 = vpop.f32.mrb[143].mxu1 }
 0x408   :  { %v2190_v47 = vadd.f32 %v2773_v37, %v3867_v38  ;;  %v2776_v19 = vadd.f32 %v2775_v46, %v2774_v39  ;;  %2845 = vmatprep.mubr.bf16.mxu1 %v2242_v44 }
 0x40a   :  { %v2193_v10 = vadd.f32 %v2776_v19, %v3867_v38  ;;  %v2226_v51 = vmax.f32 %v2190_v47, 0.0 }
 0x40c   :  { %v2227_v52 = vmax.f32 %v2193_v10, 0.0 }
 0x40e   :  { %v2243_v55 = vpack.c.bf16 %v2227_v52, %v2226_v51 }
 0x410   :  { %2846 = vmatmul.mubr.bf16.gmra.mrb[172].mxu1 %v2243_v55 }
 0x473   :  { %v2819_v56 = vpop.f32.mrb[144].mxu1 }
 0x474   :  { %v2358_v59 = vadd.f32 %v2819_v56, %v3904_v58  ;;  %v2349_v57 = vpop.f32.mrb[145].mxu1 }
 0x475   :  { %v2350_v42 = vadd.f32 %v3904_v58, %v2349_v57  ;;  %v2820_v60 = vpop.f32.mrb[146].mxu1 }
 0x476   :  { %2478 = vst [vmem:[#allocation11 + $0x10] sm:$0xff] %v2358_v59  ;;  %v2361_v2 = vadd.f32 %v2820_v60, %v3904_v58  ;;  %v2352_v38 = vpop.f32.mrb[147].mxu1 }
 0x477   :  { %2476 = vst [vmem:[#allocation11] sm:$0xff] %v2350_v42  ;;  %v2353_v4 = vadd.f32 %v3904_v58, %v2352_v38 }
 0x478   :  { %2479 = vst [vmem:[#allocation11 + $0x18] sm:$0xff] %v2361_v2 }
 0x479   :  { %2477 = vst [vmem:[#allocation11 + $0x8] sm:$0xff] %v2353_v4 }
 0x483   :  { %v2823_v5 = vpop.f32.mrb[148].mxu1 }
 0x484   :  { %v2374_v50 = vadd.f32 %v2823_v5, %v3904_v58  ;;  %v2365_v6 = vpop.f32.mrb[149].mxu1 }
 0x485   :  { %v2366_v7 = vadd.f32 %v3904_v58, %v2365_v6  ;;  %v2824_v28 = vpop.f32.mrb[150].mxu1 }
 0x486   :  { %2482 = vst [vmem:[#allocation11 + $0x30] sm:$0xff] %v2374_v50  ;;  %v2377_v24 = vadd.f32 %v2824_v28, %v3904_v58  ;;  %v2368_v53 = vpop.f32.mrb[151].mxu1 }
 0x487   :  { %2480 = vst [vmem:[#allocation11 + $0x20] sm:$0xff] %v2366_v7  ;;  %v2369_v36 = vadd.f32 %v3904_v58, %v2368_v53 }
 0x488   :  { %2483 = vst [vmem:[#allocation11 + $0x38] sm:$0xff] %v2377_v24 }
 0x489   :  { %2481 = vst [vmem:[#allocation11 + $0x28] sm:$0xff] %v2369_v36 }
 0x493   :  { %v2827_v15 = vpop.f32.mrb[152].mxu1 }
 0x494   :  { %v2390_v0 = vadd.f32 %v2827_v15, %v3904_v58  ;;  %v2381_v35 = vpop.f32.mrb[153].mxu1 }
 0x495   :  { %v2382_v16 = vadd.f32 %v3904_v58, %v2381_v35  ;;  %v2828_v41 = vpop.f32.mrb[154].mxu1 }
 0x496   :  { %2486 = vst [vmem:[#allocation11 + $0x50] sm:$0xff] %v2390_v0  ;;  %v2393_v14 = vadd.f32 %v2828_v41, %v3904_v58  ;;  %v2384_v17 = vpop.f32.mrb[155].mxu1 }
 0x497   :  { %2484 = vst [vmem:[#allocation11 + $0x40] sm:$0xff] %v2382_v16  ;;  %v2385_v20 = vadd.f32 %v3904_v58, %v2384_v17 }
 0x498   :  { %2487 = vst [vmem:[#allocation11 + $0x58] sm:$0xff] %v2393_v14 }
 0x499   :  { %2485 = vst [vmem:[#allocation11 + $0x48] sm:$0xff] %v2385_v20 }
 0x4a3   :  { %v2831_v29 = vpop.f32.mrb[156].mxu1 }
 0x4a4   :  { %v2406_v30 = vadd.f32 %v2831_v29, %v3904_v58  ;;  %v2397_v33 = vpop.f32.mrb[157].mxu1 }
 0x4a5   :  { %v2398_v62 = vadd.f32 %v3904_v58, %v2397_v33  ;;  %v2832_v34 = vpop.f32.mrb[158].mxu1 }
 0x4a6   :  { %2490 = vst [vmem:[#allocation11 + $0x70] sm:$0xff] %v2406_v30  ;;  %v2409_v32 = vadd.f32 %v2832_v34, %v3904_v58  ;;  %v2400_v13 = vpop.f32.mrb[159].mxu1 }
 0x4a7   :  { %2488 = vst [vmem:[#allocation11 + $0x60] sm:$0xff] %v2398_v62  ;;  %v2401_v18 = vadd.f32 %v3904_v58, %v2400_v13 }
 0x4a8   :  { %2491 = vst [vmem:[#allocation11 + $0x78] sm:$0xff] %v2409_v32 }
 0x4a9   :  { %2489 = vst [vmem:[#allocation11 + $0x68] sm:$0xff] %v2401_v18 }
 0x4b3   :  { %v2835_v63 = vpop.f32.mrb[160].mxu1 }
 0x4b4   :  { %v2422_v3 = vadd.f32 %v2835_v63, %v3904_v58  ;;  %v2413_v45 = vpop.f32.mrb[161].mxu1 }
 0x4b5   :  { %v2414_v48 = vadd.f32 %v3904_v58, %v2413_v45  ;;  %v2836_v27 = vpop.f32.mrb[162].mxu1 }
 0x4b6   :  { %2494 = vst [vmem:[#allocation11 + $0x90] sm:$0xff] %v2422_v3  ;;  %v2425_v31 = vadd.f32 %v2836_v27, %v3904_v58  ;;  %v2416_v8 = vpop.f32.mrb[163].mxu1 }
 0x4b7   :  { %2492 = vst [vmem:[#allocation11 + $0x80] sm:$0xff] %v2414_v48  ;;  %v2417_v9 = vadd.f32 %v3904_v58, %v2416_v8 }
 0x4b8   :  { %2495 = vst [vmem:[#allocation11 + $0x98] sm:$0xff] %v2425_v31 }
 0x4b9   :  { %2493 = vst [vmem:[#allocation11 + $0x88] sm:$0xff] %v2417_v9 }
 0x4c3   :  { %v2839_v22 = vpop.f32.mrb[164].mxu1 }
 0x4c4   :  { %v2438_v40 = vadd.f32 %v2839_v22, %v3904_v58  ;;  %v2429_v21 = vpop.f32.mrb[165].mxu1 }
 0x4c5   :  { %v2430_v23 = vadd.f32 %v3904_v58, %v2429_v21  ;;  %v2840_v43 = vpop.f32.mrb[166].mxu1 }
 0x4c6   :  { %2498 = vst [vmem:[#allocation11 + $0xb0] sm:$0xff] %v2438_v40  ;;  %v2441_v61 = vadd.f32 %v2840_v43, %v3904_v58  ;;  %v2432_v1 = vpop.f32.mrb[167].mxu1 }
 0x4c7   :  { %2496 = vst [vmem:[#allocation11 + $0xa0] sm:$0xff] %v2430_v23  ;;  %v2433_v25 = vadd.f32 %v3904_v58, %v2432_v1 }
 0x4c8   :  { %2499 = vst [vmem:[#allocation11 + $0xb8] sm:$0xff] %v2441_v61 }
 0x4c9   :  { %2497 = vst [vmem:[#allocation11 + $0xa8] sm:$0xff] %v2433_v25 }
 0x4d3   :  { %v2843_v26 = vpop.f32.mrb[168].mxu1 }
 0x4d4   :  { %v2454_v54 = vadd.f32 %v2843_v26, %v3904_v58  ;;  %v2445_v49 = vpop.f32.mrb[169].mxu1 }
 0x4d5   :  { %v2446_v11 = vadd.f32 %v3904_v58, %v2445_v49  ;;  %v2844_v12 = vpop.f32.mrb[170].mxu1 }
 0x4d6   :  { %2502 = vst [vmem:[#allocation11 + $0xd0] sm:$0xff] %v2454_v54  ;;  %v2457_v37 = vadd.f32 %v2844_v12, %v3904_v58  ;;  %v2448_v39 = vpop.f32.mrb[171].mxu1 }
 0x4d7   :  { %2500 = vst [vmem:[#allocation11 + $0xc0] sm:$0xff] %v2446_v11  ;;  %v2449_v44 = vadd.f32 %v3904_v58, %v2448_v39 }
 0x4d8   :  { %2503 = vst [vmem:[#allocation11 + $0xd8] sm:$0xff] %v2457_v37 }
 0x4d9   :  { %2501 = vst [vmem:[#allocation11 + $0xc8] sm:$0xff] %v2449_v44 }
 0x4e3   :  { %v2847_v46 = vpop.f32.mrb[172].mxu1 }
 0x4e4   :  { %v2470_v47 = vadd.f32 %v2847_v46, %v3904_v58  ;;  %v2461_v19 = vpop.f32.mrb[173].mxu1 }
 0x4e5   :  { %v2462_v10 = vadd.f32 %v3904_v58, %v2461_v19  ;;  %v2848_v51 = vpop.f32.mrb[174].mxu1 }
 0x4e6   :  { %2506 = vst [vmem:[#allocation11 + $0xf0] sm:$0xff] %v2470_v47  ;;  %v2473_v52 = vadd.f32 %v2848_v51, %v3904_v58  ;;  %v2464_v55 = vpop.f32.mrb[175].mxu1 }
 0x4e7   :  { %2504 = vst [vmem:[#allocation11 + $0xe0] sm:$0xff] %v2462_v10  ;;  %v2465_v56 = vadd.f32 %v3904_v58, %v2464_v55 }
 0x4e8   :  { %2507 = vst [vmem:[#allocation11 + $0xf8] sm:$0xff] %v2473_v52 }
 0x4e9   :  { %2505 = vst [vmem:[#allocation11 + $0xe8] sm:$0xff] %v2465_v56 }
 0x4ea   :  { %3311 = shalt.err (!%p3308_p2)
}
 0x4eb   :  { %s3312_s16 = scalar_lea.hbm %s3962_s9, 4096 }
 0x4ec   :  { %p3313_p3 = scmp.ne.s32.totalorder %s3962_s9, %s3312_s16  ;;  %p3316_p4 = scmp.lt.u32.totalorder %s3312_s16, %s3962_s9 }
 0x4ee   :  { %p3318_p5 = pnand %p3316_p4, %p3313_p3 }
 0x4f0   :  { %3321 = shalt.err (!%p3318_p5)
}
 0x4f1   :  { %2519 = dma.vmem_to_hbm [thread:$0]  %s2514_s12, 4096, %s3962_s9, [#allocation4], %s3338_s0, %s3338_s0, %s3339_s26  }
 0x4f2   :  { %3328 = dma.done.wait [#allocation4], 4096  }
 0x4f3   :  { %3329 = vsyncadd [#allocation4], 4294963200 }
 0x4f4   :  { %2523 = vsyncpa [#allocation3], 1 }
 0x4f5   :  { %2524 = vsyncpa [#allocation6], 1 }
 0x4f6   :  { %2525 = vsyncpa [#allocation9], 1 }
 0x4f7   :  { %2526 = vsyncpa [#allocation4], 1 }

</bundles_post_ra>
